<compile_context>
chip_gen: v5e
topology: v5e:2x2
jax: 0.10.0
libtpu: 0.0.40
codegen_flags: <defaults>
</compile_context>

<pallas_src>
import jax
import jax.numpy as jnp
from jax.experimental import pallas as pl
from jax.experimental.pallas import tpu as pltpu


BP = 8        # batch rows padded to one full (8, 128) sublane tile
OUT_PAD = 128  # bbox-head output padded to one full lane tile (sliced to 4)


# ----------------------------------------------------------------------------
# Fused kernel: text_proj + visual residual path + vl_transformer stand-in
#               (masked mean pool) + bbox MLP head + sigmoid
# ----------------------------------------------------------------------------
def _lpva_fused_kernel(
    text_ref,       # [bs*L_t, 768] bf16   BERT features (pre-cast in wrapper)
    visu_ref,       # [L_v*bs, 256] f32    DETR features, L-major rows
    pos_text_ref,   # [bs*L_t, 256] f32    vl_pos rows 1..L_t tiled to text rows
    pos_visu_ref,   # [L_v*bs, 256] f32    vl_pos rows 1+L_t.. repeated to visu rows
    sel_text_ref,   # [BP, bs*L_t]  f32    masked per-batch pooling selector
    sel_visu_ref,   # [BP, L_v*bs]  f32    (padded batch rows are all-zero)
    inv_cnt_ref,    # [BP, 1]       f32    1 / (1 + n_valid_text + n_valid_visu)
    regpos_ref,     # [1, 256]      f32    reg_token + vl_pos[0]   (param-only, pre-folded)
    tp_w_ref,       # [768, 256]    bf16   text_proj weight ([in, out])
    tp_b_ref,       # [1, 256]      f32
    w1_ref, b1_ref,  # [256, 256] bf16 / [1, 256] f32
    w2_ref, b2_ref,  # [256, 256] bf16 / [1, 256] f32
    w3_ref, b3_ref,  # [256, OUT_PAD] bf16 (zero-padded from [256, 4]) / [1, OUT_PAD] f32
    box_ref,        # out [BP, OUT_PAD] f32  (cols 4.. / rows bs.. are padding)
):
    f32, bf16 = jnp.float32, jnp.bfloat16

    # ---- text_last = text_proj(text_src) over the full text sequence --------
    text_tok = (
        jnp.dot(text_ref[...], tp_w_ref[...], preferred_element_type=f32)
        + tp_b_ref[...]
    ) + pos_text_ref[...]

    # ---- visual residual path ------------------------------------------------
    # TODO(synk): mhead1/2/3 (TransformerDecoderLayer_self) are not provided;
    # identity stand-ins keep the residual dataflow:
    #   fv1 = visu, fc = visu + visu, fv2 = fc, visu_fused = fv1 + fv2 = 3*visu.
    visu_tok = 3.0 * visu_ref[...] + pos_visu_ref[...]

    # ---- vl_transformer stand-in ---------------------------------------------
    # TODO(synk): build_vl_transformer is not provided.  Stand-in: the reg-token
    # output vg_hs[0] is a masked mean over the concatenated (vl_src + vl_pos)
    # sequence [reg | text_last | visu_fused], so pred_box depends on all inputs
    # (text_src, visu_src, text_mask, visu_mask).
    sum_text = jnp.dot(sel_text_ref[...], text_tok, preferred_element_type=f32)
    sum_visu = jnp.dot(sel_visu_ref[...], visu_tok, preferred_element_type=f32)
    vg0 = (regpos_ref[...] + sum_text + sum_visu) * inv_cnt_ref[...]   # [BP, 256]

    # ---- bbox_embed: MLP(256 -> 256 -> 256 -> 4, ReLU x2) + sigmoid ----------
    # f32 epilogue (bias/ReLU/sigmoid) kept: v5e-safe, sigmoid goes to EUP.
    h = jnp.dot(vg0.astype(bf16), w1_ref[...], preferred_element_type=f32) + b1_ref[...]
    h = jnp.maximum(h, 0.0)
    h = jnp.dot(h.astype(bf16), w2_ref[...], preferred_element_type=f32) + b2_ref[...]
    h = jnp.maximum(h, 0.0)
    y = jnp.dot(h.astype(bf16), w3_ref[...], preferred_element_type=f32) + b3_ref[...]
    box_ref[...] = jax.nn.sigmoid(y)        # [8, 128] = one vreg, unmasked store


def _lpva_fused_call(text_flat, visu_flat, pos_text, pos_visu, sel_text, sel_visu,
                     inv_cnt, regpos, tp_w, tp_b, w1, b1, w2, b2, w3p, b3p):
    args = (text_flat, visu_flat, pos_text, pos_visu, sel_text, sel_visu,
            inv_cnt, regpos, tp_w, tp_b, w1, b1, w2, b2, w3p, b3p)
    Mt, Ct = text_flat.shape
    Mv, H = visu_flat.shape
    flops = 2 * (Mt * Ct * H              # text_proj
                 + BP * Mt * H            # text pooling
                 + BP * Mv * H            # visu pooling
                 + 2 * BP * H * H         # MLP layers 1-2
                 + BP * H * OUT_PAD)      # MLP layer 3 (padded)
    bytes_accessed = (sum(int(a.size) * jnp.dtype(a.dtype).itemsize for a in args)
                      + BP * OUT_PAD * 4)
    vmem = pl.BlockSpec(memory_space=pltpu.MemorySpace.VMEM)
    return pl.pallas_call(
        _lpva_fused_kernel,
        out_shape=jax.ShapeDtypeStruct((BP, OUT_PAD), jnp.float32),
        in_specs=[vmem] * len(args),
        out_specs=vmem,
        cost_estimate=pl.CostEstimate(flops=flops,
                                      transcendentals=BP * OUT_PAD,
                                      bytes_accessed=bytes_accessed),
    )(*args)


# ----------------------------------------------------------------------------
# Mask plumbing (pure layout / selector construction, no heavy compute)
# ----------------------------------------------------------------------------
def _selectors_and_counts(text_mask, visu_mask, bp):
    """Selectors for masked per-batch pooling (True in a mask == padded token)."""
    f32 = jnp.float32
    bs, L_t = text_mask.shape
    L_v = visu_mask.shape[1]
    eye = (jnp.arange(bp)[:, None] == jnp.arange(bs)[None, :]).astype(f32)   # [BP, bs]
    v_t = (~text_mask).astype(f32)                                           # [bs, L_t]
    v_v = (~visu_mask).astype(f32)                                           # [bs, L_v]
    # text rows are b-major (b*L_t + t); visu rows are L-major (v*bs + b)
    sel_text = (eye[:, :, None] * v_t[None, :, :]).reshape(bp, bs * L_t)
    sel_visu = (eye[:, None, :] * v_v.T[None, :, :]).reshape(bp, L_v * bs)
    cnt = 1.0 + v_t.sum(axis=1) + v_v.sum(axis=1)                            # [bs]
    inv_cnt = jnp.ones((bp, 1), f32).at[:bs, 0].set(1.0 / cnt)
    return sel_text, sel_visu, inv_cnt


# ----------------------------------------------------------------------------
# LPVA forward (thin glue; all hot-path compute in the one fused kernel)
# ----------------------------------------------------------------------------
def lpva_forward(params, text_src, text_mask, visu_src, visu_mask):
    """
    text_src : [bs, L_t, 768]   BERT last hidden states (synthetic backbone output)
    text_mask: [bs, L_t]  bool  True = padded token
    visu_src : [L_v, bs, 256]   DETR visual features (synthetic backbone output)
    visu_mask: [bs, L_v]  bool  True = padded token
    returns  : pred_box [bs, 4]
    """
    bs, L_t, c_txt = text_src.shape
    L_v, _, H = visu_src.shape
    assert bs <= BP

    # TODO(synk): build_bert / build_detr backbones are not provided; text_src /
    # visu_src stand in for their outputs.  `texts = text_embd(text_src[:,0,:])`
    # feeds only the missing DETR branch, so it is dead w.r.t. the output and
    # is not computed.

    # Lane-dense flattening (channel axis last = lane dim); text pre-cast to
    # bf16 so its HBM->VMEM DMA is halved and no convert runs in the kernel.
    text_flat = text_src.reshape(bs * L_t, c_txt).astype(jnp.bfloat16)
    visu_flat = visu_src.reshape(L_v * bs, H)          # contiguous, no transpose

    pos = params["vl_pos_embed"]                       # [1 + L_t + L_v, H]
    pos_text = jnp.tile(pos[1:1 + L_t], (bs, 1))                       # row b*L_t+t -> pos[1+t]
    pos_visu = jnp.repeat(pos[1 + L_t:1 + L_t + L_v], bs, axis=0)      # row v*bs+b -> pos[1+L_t+v]

    sel_text, sel_visu, inv_cnt = _selectors_and_counts(text_mask, visu_mask, BP)

    box_pad = _lpva_fused_call(
        text_flat, visu_flat, pos_text, pos_visu, sel_text, sel_visu, inv_cnt,
        params["regpos"],
        params["text_proj_w"], params["text_proj_b"],
        params["mlp_w1"], params["mlp_b1"],
        params["mlp_w2"], params["mlp_b2"],
        params["mlp_w3p"], params["mlp_b3p"],
    )
    return box_pad[:bs, :4]


# ----------------------------------------------------------------------------
# Deterministic parameters (PyTorch-style init) + kernel-ready preparation
# ----------------------------------------------------------------------------
def make_params(key, hidden=256, c_txt=768, n_total=25):
    ks = jax.random.split(key, 10)
    u = lambda k, shape, fan_in: jax.random.uniform(
        k, shape, jnp.float32, -1.0 / jnp.sqrt(fan_in), 1.0 / jnp.sqrt(fan_in))
    return {
        # text_proj: nn.Linear(textmodel.num_channels=768, hidden_dim)  [in, out]
        "text_proj_w": u(ks[0], (c_txt, hidden), c_txt),
        "text_proj_b": u(ks[1], (hidden,), c_txt),
        # embeddings
        "reg_token": jax.random.normal(ks[2], (1, hidden), jnp.float32),
        "vl_pos_embed": jax.random.normal(ks[3], (n_total, hidden), jnp.float32),
        # bbox_embed: MLP(hidden, hidden, 4, num_layers=3)  [in, out]
        "mlp_w1": u(ks[4], (hidden, hidden), hidden),
        "mlp_b1": u(ks[5], (hidden,), hidden),
        "mlp_w2": u(ks[6], (hidden, hidden), hidden),
        "mlp_b2": u(ks[7], (hidden,), hidden),
        "mlp_w3": u(ks[8], (hidden, 4), hidden),
        "mlp_b3": u(ks[9], (4,), hidden),
    }


def prepare_params(p, out_pad=OUT_PAD):
    """bf16 MXU-operand weights, f32 [1, N] biases, 128-lane-padded bbox head,
    parameter-only reg_token + vl_pos[0] folded once here."""
    hidden, n_out = p["mlp_w3"].shape
    w3p = jnp.zeros((hidden, out_pad), jnp.bfloat16).at[:, :n_out].set(
        p["mlp_w3"].astype(jnp.bfloat16))
    b3p = jnp.zeros((1, out_pad), jnp.float32).at[0, :n_out].set(p["mlp_b3"])
    return {
        "text_proj_w": p["text_proj_w"].astype(jnp.bfloat16),
        "text_proj_b": p["text_proj_b"].reshape(1, -1).astype(jnp.float32),
        "vl_pos_embed": p["vl_pos_embed"].astype(jnp.float32),
        "regpos": (p["reg_token"] + p["vl_pos_embed"][0:1]).astype(jnp.float32),
        "mlp_w1": p["mlp_w1"].astype(jnp.bfloat16),
        "mlp_b1": p["mlp_b1"].reshape(1, -1).astype(jnp.float32),
        "mlp_w2": p["mlp_w2"].astype(jnp.bfloat16),
        "mlp_b2": p["mlp_b2"].reshape(1, -1).astype(jnp.float32),
        "mlp_w3p": w3p,
        "mlp_b3p": b3p,
    }


if __name__ == "__main__":
    # Small config: imsize=128, dilation=False -> divisor=32 -> L_v=(128/32)^2=16,
    # max_query_len=8, vl_hidden_dim=256, BERT channels=768.
    bs, L_t, L_v, hidden, c_txt = 2, 8, 16, 256, 768
    n_total = L_v + L_t + 1

    key = jax.random.PRNGKey(0)
    k_par, k_ts, k_vs = jax.random.split(key, 3)

    params = prepare_params(make_params(k_par, hidden=hidden, c_txt=c_txt, n_total=n_total))

    # Synthetic backbone outputs (see TODO(synk) in lpva_forward).
    text_src = jax.random.normal(k_ts, (bs, L_t, c_txt), jnp.float32)
    # batch 0: full length; batch 1: last two text tokens padded (mask exercised)
    lens = jnp.array([L_t, L_t - 2])
    text_mask = jnp.arange(L_t)[None, :] >= lens[:, None]          # [bs, L_t] bool
    visu_src = jax.random.normal(k_vs, (L_v, bs, hidden), jnp.float32)
    visu_mask = jnp.zeros((bs, L_v), dtype=bool)

    fwd = jax.jit(lpva_forward)
    pred_box = jax.block_until_ready(fwd(params, text_src, text_mask, visu_src, visu_mask))

    assert pred_box.shape == (bs, 4)
    assert bool(jnp.all(jnp.isfinite(pred_box)))
    assert bool(jnp.all((pred_box >= 0.0) & (pred_box <= 1.0)))
    print("KERNEL_OK")
</pallas_src>

<mosaic_0001>
module attributes {stable_mosaic.version = 11 : i64} {
  func.func @_lpva_fused_kernel(%arg0: memref<16x768xbf16, #tpu.memory_space<vmem>>, %arg1: memref<32x256xf32, #tpu.memory_space<vmem>>, %arg2: memref<16x256xf32, #tpu.memory_space<vmem>>, %arg3: memref<32x256xf32, #tpu.memory_space<vmem>>, %arg4: memref<8x16xf32, #tpu.memory_space<vmem>>, %arg5: memref<8x32xf32, #tpu.memory_space<vmem>>, %arg6: memref<8x1xf32, #tpu.memory_space<vmem>>, %arg7: memref<1x256xf32, #tpu.memory_space<vmem>>, %arg8: memref<768x256xbf16, #tpu.memory_space<vmem>>, %arg9: memref<1x256xf32, #tpu.memory_space<vmem>>, %arg10: memref<256x256xbf16, #tpu.memory_space<vmem>>, %arg11: memref<1x256xf32, #tpu.memory_space<vmem>>, %arg12: memref<256x256xbf16, #tpu.memory_space<vmem>>, %arg13: memref<1x256xf32, #tpu.memory_space<vmem>>, %arg14: memref<256x128xbf16, #tpu.memory_space<vmem>>, %arg15: memref<1x128xf32, #tpu.memory_space<vmem>>, %arg16: memref<8x128xf32, #tpu.memory_space<vmem>>) attributes {dimension_semantics = [], scalar_prefetch = 0 : i64, scratch_operands = 0 : i64, tpu.core_type = #tpu.core_type<tc>} {
    %c0 = arith.constant 0 : index
    %c0_0 = arith.constant 0 : index
    %0 = vector.load %arg0[%c0, %c0_0] : memref<16x768xbf16, #tpu.memory_space<vmem>>, vector<16x768xbf16>
    %c0_1 = arith.constant 0 : index
    %c0_2 = arith.constant 0 : index
    %1 = vector.load %arg8[%c0_1, %c0_2] : memref<768x256xbf16, #tpu.memory_space<vmem>>, vector<768x256xbf16>
    %cst = arith.constant dense<0.000000e+00> : vector<16x256xf32>
    %2 = tpu.matmul %0, %1, %cst {dimension_numbers = #tpu.dot_dimension_numbers<[1], [0], [0], [1], [0, 0, 1, 1], [], []>} : vector<16x768xbf16>, vector<768x256xbf16>, vector<16x256xf32> -> vector<16x256xf32>
    %c0_3 = arith.constant 0 : index
    %c0_4 = arith.constant 0 : index
    %3 = vector.load %arg9[%c0_3, %c0_4] : memref<1x256xf32, #tpu.memory_space<vmem>>, vector<1x256xf32>
    %4 = vector.broadcast %3 : vector<1x256xf32> to vector<16x256xf32>
    %5 = arith.addf %2, %4 : vector<16x256xf32>
    %c0_5 = arith.constant 0 : index
    %c0_6 = arith.constant 0 : index
    %6 = vector.load %arg2[%c0_5, %c0_6] : memref<16x256xf32, #tpu.memory_space<vmem>>, vector<16x256xf32>
    %7 = arith.addf %5, %6 : vector<16x256xf32>
    %c0_7 = arith.constant 0 : index
    %c0_8 = arith.constant 0 : index
    %8 = vector.load %arg1[%c0_7, %c0_8] : memref<32x256xf32, #tpu.memory_space<vmem>>, vector<32x256xf32>
    %cst_9 = arith.constant 3.000000e+00 : f32
    %9 = vector.broadcast %cst_9 : f32 to vector<32x256xf32>
    %10 = arith.mulf %9, %8 : vector<32x256xf32>
    %c0_10 = arith.constant 0 : index
    %c0_11 = arith.constant 0 : index
    %11 = vector.load %arg3[%c0_10, %c0_11] : memref<32x256xf32, #tpu.memory_space<vmem>>, vector<32x256xf32>
    %12 = arith.addf %10, %11 : vector<32x256xf32>
    %c0_12 = arith.constant 0 : index
    %c0_13 = arith.constant 0 : index
    %13 = vector.load %arg4[%c0_12, %c0_13] : memref<8x16xf32, #tpu.memory_space<vmem>>, vector<8x16xf32>
    %cst_14 = arith.constant dense<0.000000e+00> : vector<8x256xf32>
    %14 = tpu.matmul %13, %7, %cst_14 {dimension_numbers = #tpu.dot_dimension_numbers<[1], [0], [0], [1], [0, 0, 1, 1], [], []>} : vector<8x16xf32>, vector<16x256xf32>, vector<8x256xf32> -> vector<8x256xf32>
    %c0_15 = arith.constant 0 : index
    %c0_16 = arith.constant 0 : index
    %15 = vector.load %arg5[%c0_15, %c0_16] : memref<8x32xf32, #tpu.memory_space<vmem>>, vector<8x32xf32>
    %cst_17 = arith.constant dense<0.000000e+00> : vector<8x256xf32>
    %16 = tpu.matmul %15, %12, %cst_17 {dimension_numbers = #tpu.dot_dimension_numbers<[1], [0], [0], [1], [0, 0, 1, 1], [], []>} : vector<8x32xf32>, vector<32x256xf32>, vector<8x256xf32> -> vector<8x256xf32>
    %c0_18 = arith.constant 0 : index
    %c0_19 = arith.constant 0 : index
    %17 = vector.load %arg7[%c0_18, %c0_19] : memref<1x256xf32, #tpu.memory_space<vmem>>, vector<1x256xf32>
    %18 = vector.broadcast %17 : vector<1x256xf32> to vector<8x256xf32>
    %19 = arith.addf %18, %14 : vector<8x256xf32>
    %20 = arith.addf %19, %16 : vector<8x256xf32>
    %c0_20 = arith.constant 0 : index
    %c0_21 = arith.constant 0 : index
    %21 = vector.load %arg6[%c0_20, %c0_21] : memref<8x1xf32, #tpu.memory_space<vmem>>, vector<8x1xf32>
    %22 = vector.broadcast %21 : vector<8x1xf32> to vector<8x256xf32>
    %23 = arith.mulf %20, %22 : vector<8x256xf32>
    %24 = arith.truncf %23 : vector<8x256xf32> to vector<8x256xbf16>
    %c0_22 = arith.constant 0 : index
    %c0_23 = arith.constant 0 : index
    %25 = vector.load %arg10[%c0_22, %c0_23] : memref<256x256xbf16, #tpu.memory_space<vmem>>, vector<256x256xbf16>
    %cst_24 = arith.constant dense<0.000000e+00> : vector<8x256xf32>
    %26 = tpu.matmul %24, %25, %cst_24 {dimension_numbers = #tpu.dot_dimension_numbers<[1], [0], [0], [1], [0, 0, 1, 1], [], []>} : vector<8x256xbf16>, vector<256x256xbf16>, vector<8x256xf32> -> vector<8x256xf32>
    %c0_25 = arith.constant 0 : index
    %c0_26 = arith.constant 0 : index
    %27 = vector.load %arg11[%c0_25, %c0_26] : memref<1x256xf32, #tpu.memory_space<vmem>>, vector<1x256xf32>
    %28 = vector.broadcast %27 : vector<1x256xf32> to vector<8x256xf32>
    %29 = arith.addf %26, %28 : vector<8x256xf32>
    %cst_27 = arith.constant 0.000000e+00 : f32
    %30 = vector.broadcast %cst_27 : f32 to vector<8x256xf32>
    %31 = arith.maximumf %29, %30 : vector<8x256xf32>
    %32 = arith.truncf %31 : vector<8x256xf32> to vector<8x256xbf16>
    %c0_28 = arith.constant 0 : index
    %c0_29 = arith.constant 0 : index
    %33 = vector.load %arg12[%c0_28, %c0_29] : memref<256x256xbf16, #tpu.memory_space<vmem>>, vector<256x256xbf16>
    %cst_30 = arith.constant dense<0.000000e+00> : vector<8x256xf32>
    %34 = tpu.matmul %32, %33, %cst_30 {dimension_numbers = #tpu.dot_dimension_numbers<[1], [0], [0], [1], [0, 0, 1, 1], [], []>} : vector<8x256xbf16>, vector<256x256xbf16>, vector<8x256xf32> -> vector<8x256xf32>
    %c0_31 = arith.constant 0 : index
    %c0_32 = arith.constant 0 : index
    %35 = vector.load %arg13[%c0_31, %c0_32] : memref<1x256xf32, #tpu.memory_space<vmem>>, vector<1x256xf32>
    %36 = vector.broadcast %35 : vector<1x256xf32> to vector<8x256xf32>
    %37 = arith.addf %34, %36 : vector<8x256xf32>
    %cst_33 = arith.constant 0.000000e+00 : f32
    %38 = vector.broadcast %cst_33 : f32 to vector<8x256xf32>
    %39 = arith.maximumf %37, %38 : vector<8x256xf32>
    %40 = arith.truncf %39 : vector<8x256xf32> to vector<8x256xbf16>
    %c0_34 = arith.constant 0 : index
    %c0_35 = arith.constant 0 : index
    %41 = vector.load %arg14[%c0_34, %c0_35] : memref<256x128xbf16, #tpu.memory_space<vmem>>, vector<256x128xbf16>
    %cst_36 = arith.constant dense<0.000000e+00> : vector<8x128xf32>
    %42 = tpu.matmul %40, %41, %cst_36 {dimension_numbers = #tpu.dot_dimension_numbers<[1], [0], [0], [1], [0, 0, 1, 1], [], []>} : vector<8x256xbf16>, vector<256x128xbf16>, vector<8x128xf32> -> vector<8x128xf32>
    %c0_37 = arith.constant 0 : index
    %c0_38 = arith.constant 0 : index
    %43 = vector.load %arg15[%c0_37, %c0_38] : memref<1x128xf32, #tpu.memory_space<vmem>>, vector<1x128xf32>
    %44 = vector.broadcast %43 : vector<1x128xf32> to vector<8x128xf32>
    %45 = arith.addf %42, %44 : vector<8x128xf32>
    %46 = arith.negf %45 : vector<8x128xf32>
    %47 = math.exp %46 : vector<8x128xf32>
    %cst_39 = arith.constant 1.000000e+00 : f32
    %48 = vector.broadcast %cst_39 : f32 to vector<8x128xf32>
    %49 = arith.addf %48, %47 : vector<8x128xf32>
    %50 = arith.divf %48, %49 : vector<8x128xf32>
    %c0_40 = arith.constant 0 : index
    %c0_41 = arith.constant 0 : index
    %51 = vector.load %arg16[%c0_40, %c0_41] : memref<8x128xf32, #tpu.memory_space<vmem>>, vector<8x128xf32>
    tpu.vector_store %arg16[%c0_40, %c0_41], %50 {strides = array<i32>} : memref<8x128xf32, #tpu.memory_space<vmem>>, vector<8x128xf32>,
    return
  }
}

</mosaic_0001>

<bundles_post_ra>
// kernel: lpva_forward.1
= control target key start
LH: loop header
LB: loop body
LE: loop exit
PB: predicated region body
PF: predicated region fallthrough
CT: control target
= control target key end

     0   :  { %s3582_s0 = inlined_call_operand.vmem [shape: bf16[16,768], index: 0, kind: input, shape index: {}]   ;;  %s3583_s1 = inlined_call_operand.vmem [shape: f32[32,256], index: 1, kind: input, shape index: {}]   ;;  %s3584_s2 = inlined_call_operand.vmem [shape: f32[16,256], index: 2, kind: input, shape index: {}]   ;;  %s3585_s3 = inlined_call_operand.vmem [shape: f32[32,256], index: 3, kind: input, shape index: {}]   ;;  %s3586_s4 = inlined_call_operand.vmem [shape: f32[8,16], index: 4, kind: input, shape index: {}]   ;;  %s3587_s5 = inlined_call_operand.vmem [shape: f32[8,32], index: 5, kind: input, shape index: {}]   ;;  %s3588_s6 = inlined_call_operand.vmem [shape: f32[8,1], index: 6, kind: input, shape index: {}]   ;;  %s3589_s7 = inlined_call_operand.vmem [shape: f32[1,256], index: 7, kind: input, shape index: {}]   ;;  %s3590_s8 = inlined_call_operand.vmem [shape: bf16[768,256], index: 8, kind: input, shape index: {}]   ;;  %s3591_s9 = inlined_call_operand.vmem [shape: f32[1,256], index: 9, kind: input, shape index: {}]   ;;  %s3592_s10 = inlined_call_operand.hbm [shape: bf16[256,256], index: 10, kind: input, shape index: {}]   ;;  %s3593_s11 = inlined_call_operand.vmem [shape: f32[1,256], index: 11, kind: input, shape index: {}]   ;;  %s3594_s12 = inlined_call_operand.hbm [shape: bf16[256,256], index: 12, kind: input, shape index: {}]   ;;  %s3595_s13 = inlined_call_operand.vmem [shape: f32[1,256], index: 13, kind: input, shape index: {}]   ;;  %s3596_s14 = inlined_call_operand.hbm [shape: bf16[256,128], index: 14, kind: input, shape index: {}]   ;;  %s3597_s15 = inlined_call_operand.vmem [shape: f32[1,128], index: 15, kind: input, shape index: {}]   ;;  %s3598_s16 = inlined_call_operand.vmem [shape: f32[8,128], index: 16, kind: output, shape index: {}]  }
   0x1   :  { %3600 = sst [smem:[#allocation9_spill]] %s3582_s0 }
   0x2   :  { %21 = vsyncpa [#allocation3], 0 }
   0x3   :  { %22 = vsyncpa [#allocation5], 0  ;;  %s62_s23 = sshll.u32 %s3594_s12, 4  ;;  %s2733_s24 = smov [#allocation4]   ;;  %s63_s23 = int_to_ptr.hbm [resolvable:$true] %s62_s23 }
   0x4   :  { %s64_s25 = sshll.u32 %s2733_s24, 4  ;;  %s47_s28 = sshll.u32 %s3592_s10, 4  ;;  %s65_s25 = int_to_ptr.vmem [resolvable:$true] %s64_s25  ;;  %s48_s28 = int_to_ptr.hbm [resolvable:$true] %s47_s28 }
   0x5   :  { %s2734_s29 = smov 128   ;;  %s2735_s30 = smov 8  }
   0x6   :  { %70 = dma.hbm_to_vmem [thread:$0]  %s63_s23, 4096, %s65_s25, [#allocation5], %s2734_s29, %s2734_s29, %s2735_s30  }
   0x7   :  { %s2736_s0 = smov [#allocation2]   ;;  %s77_s20 = sshll.u32 %s3596_s14, 4  ;;  %s78_s20 = int_to_ptr.hbm [resolvable:$true] %s77_s20 }
   0x8   :  { %s49_s17 = sshll.u32 %s2736_s0, 4  ;;  %s2737_s12 = smov [#allocation6]   ;;  %s50_s17 = int_to_ptr.vmem [resolvable:$true] %s49_s17 }
   0x9   :  { %55 = dma.hbm_to_vmem [thread:$0]  %s48_s28, 4096, %s50_s17, [#allocation3], %s2734_s29, %s2734_s29, %s2735_s30  }
   0xa   :  { %s79_s21 = sshll.u32 %s2737_s12, 4  ;;  %s2738_s22 = smov 64   ;;  %s80_s21 = int_to_ptr.vmem [resolvable:$true] %s79_s21 }
   0xb   :  { %s2739_s24 = smov 4  }
   0xc   :  { %85 = dma.hbm_to_vmem [thread:$0]  %s78_s20, 2048, %s80_s21, [#allocation5], %s2738_s22, %s2738_s22, %s2739_s24  }
   0xd   :  { %2729 = dma.done.wait [#allocation3], 4096  }
   0xe   :  { %2730 = vsyncadd [#allocation3], 4294963200 }
   0xf   :  { %2731 = dma.done.wait [#allocation5], 6144  }
  0x10   :  { %2732 = vsyncadd [#allocation5], 4294961152  ;;  %v1810_v0 = vld [vmem:[%s3590_s8 + $0x70] sm:$0xf]  ;;  %v2482_v1 = vld [vmem:[%s3590_s8 + $0x74] sm:$0xf0] }
  0x11   :  { %v1874_v2 = vld [vmem:[%s3590_s8 + $0xf0] sm:$0xf]  ;;  %v1811_v3 = vor.u32 %v2482_v1, %v1810_v0  ;;  %v2498_v4 = vld [vmem:[%s3590_s8 + $0xf4] sm:$0xf0]  ;;  %v1802_v11 = vld [vmem:[%s3590_s8 + $0x60] sm:$0xf] }
  0x12   :  { %v1938_v5 = vld [vmem:[%s3590_s8 + $0x170] sm:$0xf]  ;;  %v2514_v6 = vld [vmem:[%s3590_s8 + $0x174] sm:$0xf0]  ;;  %v1875_v7 = vor.u32 %v2498_v4, %v1874_v2  ;;  %v2480_v13 = vld [vmem:[%s3590_s8 + $0x64] sm:$0xf0] }
  0x13   :  { %v1939_v8 = vor.u32 %v2514_v6, %v1938_v5  ;;  %v2002_v9 = vld [vmem:[%s3590_s8 + $0x1f0] sm:$0xf]  ;;  %v2530_v10 = vld [vmem:[%s3590_s8 + $0x1f4] sm:$0xf0]  ;;  %718 = vmatpush.bf16.msra.mxu0 %v1811_v3  ;;  %v1866_v14 = vld [vmem:[%s3590_s8 + $0xe0] sm:$0xf]  ;;  %v1803_v16 = vor.u32 %v2480_v13, %v1802_v11 }
  0x14   :  { %v2003_v12 = vor.u32 %v2530_v10, %v2002_v9  ;;  %v2496_v15 = vld [vmem:[%s3590_s8 + $0xe4] sm:$0xf0]  ;;  %732 = vmatpush.bf16.msra.mxu1 %v1875_v7  ;;  %v1930_v18 = vld [vmem:[%s3590_s8 + $0x160] sm:$0xf]  ;;  %v1794_v23 = vld [vmem:[%s3590_s8 + $0x50] sm:$0xf] }
  0x15   :  { %746 = vmatpush.bf16.msra.mxu2 %v1939_v8  ;;  %v1867_v17 = vor.u32 %v2496_v15, %v1866_v14  ;;  %v2512_v19 = vld [vmem:[%s3590_s8 + $0x164] sm:$0xf0]  ;;  %v1994_v20 = vld [vmem:[%s3590_s8 + $0x1e0] sm:$0xf]  ;;  %v2478_v24 = vld [vmem:[%s3590_s8 + $0x54] sm:$0xf0] }
  0x16   :  { %760 = vmatpush.bf16.msra.mxu3 %v2003_v12  ;;  %v1931_v21 = vor.u32 %v2512_v19, %v1930_v18  ;;  %v2528_v22 = vld [vmem:[%s3590_s8 + $0x1e4] sm:$0xf0]  ;;  %v1858_v26 = vld [vmem:[%s3590_s8 + $0xd0] sm:$0xf]  ;;  %v2494_v27 = vld [vmem:[%s3590_s8 + $0xd4] sm:$0xf0]  ;;  %v1795_v29 = vor.u32 %v2478_v24, %v1794_v23 }
  0x17   :  { %v1995_v25 = vor.u32 %v2528_v22, %v1994_v20  ;;  %v1922_v28 = vld [vmem:[%s3590_s8 + $0x150] sm:$0xf]  ;;  %719 = vmatpush.bf16.msra.mxu0 %v1803_v16  ;;  %v2510_v30 = vld [vmem:[%s3590_s8 + $0x154] sm:$0xf0]  ;;  %v1859_v33 = vor.u32 %v2494_v27, %v1858_v26  ;;  %v1786_v35 = vld [vmem:[%s3590_s8 + $0x40] sm:$0xf] }
  0x18   :  { %v1986_v31 = vld [vmem:[%s3590_s8 + $0x1d0] sm:$0xf]  ;;  %v2526_v32 = vld [vmem:[%s3590_s8 + $0x1d4] sm:$0xf0]  ;;  %733 = vmatpush.bf16.msra.mxu1 %v1867_v17  ;;  %v1923_v34 = vor.u32 %v2510_v30, %v1922_v28  ;;  %v2476_v36 = vld [vmem:[%s3590_s8 + $0x44] sm:$0xf0] }
  0x19   :  { %747 = vmatpush.bf16.msra.mxu2 %v1931_v21  ;;  %v1850_v37 = vld [vmem:[%s3590_s8 + $0xc0] sm:$0xf]  ;;  %v1987_v38 = vor.u32 %v2526_v32, %v1986_v31  ;;  %v2492_v39 = vld [vmem:[%s3590_s8 + $0xc4] sm:$0xf0]  ;;  %v1787_v44 = vor.u32 %v2476_v36, %v1786_v35  ;;  %v1778_v47 = vld [vmem:[%s3590_s8 + $0x30] sm:$0xf] }
  0x1a   :  { %761 = vmatpush.bf16.msra.mxu3 %v1995_v25  ;;  %v1914_v40 = vld [vmem:[%s3590_s8 + $0x140] sm:$0xf]  ;;  %v2508_v41 = vld [vmem:[%s3590_s8 + $0x144] sm:$0xf0]  ;;  %v1851_v45 = vor.u32 %v2492_v39, %v1850_v37  ;;  %v2474_v48 = vld [vmem:[%s3590_s8 + $0x34] sm:$0xf0] }
  0x1b   :  { %v1978_v42 = vld [vmem:[%s3590_s8 + $0x1c0] sm:$0xf]  ;;  %v2524_v43 = vld [vmem:[%s3590_s8 + $0x1c4] sm:$0xf0]  ;;  %720 = vmatpush.bf16.msra.mxu0 %v1795_v29  ;;  %v1915_v46 = vor.u32 %v2508_v41, %v1914_v40  ;;  %v1842_v49 = vld [vmem:[%s3590_s8 + $0xb0] sm:$0xf]  ;;  %v1779_v56 = vor.u32 %v2474_v48, %v1778_v47 }
  0x1c   :  { %734 = vmatpush.bf16.msra.mxu1 %v1859_v33  ;;  %v1979_v50 = vor.u32 %v2524_v43, %v1978_v42  ;;  %v2490_v51 = vld [vmem:[%s3590_s8 + $0xb4] sm:$0xf0]  ;;  %v1906_v52 = vld [vmem:[%s3590_s8 + $0x130] sm:$0xf]  ;;  %v1770_v59 = vld [vmem:[%s3590_s8 + $0x20] sm:$0xf] }
  0x1d   :  { %748 = vmatpush.bf16.msra.mxu2 %v1923_v34  ;;  %v2506_v53 = vld [vmem:[%s3590_s8 + $0x134] sm:$0xf0]  ;;  %v1970_v54 = vld [vmem:[%s3590_s8 + $0x1b0] sm:$0xf]  ;;  %v1843_v57 = vor.u32 %v2490_v51, %v1842_v49  ;;  %v2472_v60 = vld [vmem:[%s3590_s8 + $0x24] sm:$0xf0] }
  0x1e   :  { %762 = vmatpush.bf16.msra.mxu3 %v1987_v38  ;;  %v2522_v55 = vld [vmem:[%s3590_s8 + $0x1b4] sm:$0xf0]  ;;  %v1907_v58 = vor.u32 %v2506_v53, %v1906_v52  ;;  %v1834_v61 = vld [vmem:[%s3590_s8 + $0xa0] sm:$0xf]  ;;  %v2488_v63 = vld [vmem:[%s3590_s8 + $0xa4] sm:$0xf0]  ;;  %v1771_v4 = vor.u32 %v2472_v60, %v1770_v59 }
  0x1f   :  { %721 = vmatpush.bf16.msra.mxu0 %v1787_v44  ;;  %v1971_v62 = vor.u32 %v2522_v55, %v1970_v54  ;;  %v1898_v0 = vld [vmem:[%s3590_s8 + $0x120] sm:$0xf]  ;;  %v2504_v1 = vld [vmem:[%s3590_s8 + $0x124] sm:$0xf0]  ;;  %v1835_v5 = vor.u32 %v2488_v63, %v1834_v61  ;;  %v1762_v7 = vld [vmem:[%s3590_s8 + $0x10] sm:$0xf] }
  0x20   :  { %735 = vmatpush.bf16.msra.mxu1 %v1851_v45  ;;  %v1962_v2 = vld [vmem:[%s3590_s8 + $0x1a0] sm:$0xf]  ;;  %v2520_v3 = vld [vmem:[%s3590_s8 + $0x1a4] sm:$0xf0]  ;;  %v1899_v6 = vor.u32 %v2504_v1, %v1898_v0  ;;  %v2470_v8 = vld [vmem:[%s3590_s8 + $0x14] sm:$0xf0] }
  0x21   :  { %749 = vmatpush.bf16.msra.mxu2 %v1915_v46  ;;  %v1826_v9 = vld [vmem:[%s3590_s8 + $0x90] sm:$0xf]  ;;  %v1963_v10 = vor.u32 %v2520_v3, %v1962_v2  ;;  %v2486_v11 = vld [vmem:[%s3590_s8 + $0x94] sm:$0xf0]  ;;  %v1763_v16 = vor.u32 %v2470_v8, %v1762_v7  ;;  %v1754_v17 = vld [vmem:[%s3590_s8] sm:$0xf] }
  0x22   :  { %763 = vmatpush.bf16.msra.mxu3 %v1979_v50  ;;  %v1890_v12 = vld [vmem:[%s3590_s8 + $0x110] sm:$0xf]  ;;  %v2502_v13 = vld [vmem:[%s3590_s8 + $0x114] sm:$0xf0]  ;;  %v2468_v18 = vld [vmem:[%s3590_s8 + $0x4] sm:$0xf0]  ;;  %v1827_v19 = vor.u32 %v2486_v11, %v1826_v9 }
  0x23   :  { %722 = vmatpush.bf16.msra.mxu0 %v1779_v56  ;;  %v1954_v14 = vld [vmem:[%s3590_s8 + $0x190] sm:$0xf]  ;;  %v2518_v15 = vld [vmem:[%s3590_s8 + $0x194] sm:$0xf0]  ;;  %v1891_v20 = vor.u32 %v2502_v13, %v1890_v12  ;;  %v1818_v21 = vld [vmem:[%s3590_s8 + $0x80] sm:$0xf]  ;;  %v1755_v31 = vor.u32 %v2468_v18, %v1754_v17 }
  0x24   :  { %736 = vmatpush.bf16.msra.mxu1 %v1843_v57  ;;  %v2484_v22 = vld [vmem:[%s3590_s8 + $0x84] sm:$0xf0]  ;;  %v1882_v23 = vld [vmem:[%s3590_s8 + $0x100] sm:$0xf]  ;;  %v1955_v24 = vor.u32 %v2518_v15, %v1954_v14  ;;  %v2066_v28 = vld [vmem:[%s3590_s8 + $0x270] sm:$0xf] }
  0x25   :  { %750 = vmatpush.bf16.msra.mxu2 %v1907_v58  ;;  %v2500_v25 = vld [vmem:[%s3590_s8 + $0x104] sm:$0xf0]  ;;  %v1946_v26 = vld [vmem:[%s3590_s8 + $0x180] sm:$0xf]  ;;  %v2546_v29 = vld [vmem:[%s3590_s8 + $0x274] sm:$0xf0]  ;;  %v1819_v35 = vor.u32 %v2484_v22, %v1818_v21 }
  0x26   :  { %764 = vmatpush.bf16.msra.mxu3 %v1971_v62  ;;  %v2516_v27 = vld [vmem:[%s3590_s8 + $0x184] sm:$0xf0]  ;;  %v2130_v30 = vld [vmem:[%s3590_s8 + $0x2f0] sm:$0xf]  ;;  %v2562_v32 = vld [vmem:[%s3590_s8 + $0x2f4] sm:$0xf0]  ;;  %v1883_v36 = vor.u32 %v2500_v25, %v1882_v23  ;;  %v2067_v40 = vor.u32 %v2546_v29, %v2066_v28 }
  0x27   :  { %723 = vmatpush.bf16.msra.mxu0 %v1771_v4  ;;  %v2481_v33 = vld [vmem:[%s3590_s8 + $0x74] sm:$0xf]  ;;  %v1812_v34 = vld [vmem:[%s3590_s8 + $0x78] sm:$0xf0]  ;;  %v1947_v39 = vor.u32 %v2516_v27, %v1946_v26  ;;  %v2058_v41 = vld [vmem:[%s3590_s8 + $0x260] sm:$0xf]  ;;  %v2131_v42 = vor.u32 %v2562_v32, %v2130_v30 }
  0x28   :  { %737 = vmatpush.bf16.msra.mxu1 %v1835_v5  ;;  %v2497_v37 = vld [vmem:[%s3590_s8 + $0xf4] sm:$0xf]  ;;  %v1876_v38 = vld [vmem:[%s3590_s8 + $0xf8] sm:$0xf0]  ;;  %v1815_v43 = vor.u32 %v2481_v33, %v1812_v34  ;;  %v2544_v44 = vld [vmem:[%s3590_s8 + $0x264] sm:$0xf0] }
  0x29   :  { %751 = vmatpush.bf16.msra.mxu2 %v1899_v6  ;;  %v2122_v45 = vld [vmem:[%s3590_s8 + $0x2e0] sm:$0xf]  ;;  %v2560_v46 = vld [vmem:[%s3590_s8 + $0x2e4] sm:$0xf0]  ;;  %v1879_v47 = vor.u32 %v2497_v37, %v1876_v38  ;;  %v2479_v48 = vld [vmem:[%s3590_s8 + $0x64] sm:$0xf]  ;;  %v2059_v54 = vor.u32 %v2544_v44, %v2058_v41 }
  0x2a   :  { %765 = vmatpush.bf16.msra.mxu3 %v1963_v10  ;;  %v1804_v49 = vld [vmem:[%s3590_s8 + $0x68] sm:$0xf0]  ;;  %v2495_v50 = vld [vmem:[%s3590_s8 + $0xe4] sm:$0xf]  ;;  %s3601_s10 = sld [smem:[#allocation9_spill]]  ;;  %v2123_v59 = vor.u32 %v2560_v46, %v2122_v45  ;;  %vm927_vm0 = vcmask 130048  }
  0x2b   :  { %724 = vmatpush.bf16.msra.mxu0 %v1763_v16  ;;  %v1868_v51 = vld [vmem:[%s3590_s8 + $0xe8] sm:$0xf0]  ;;  %v2050_v55 = vld [vmem:[%s3590_s8 + $0x250] sm:$0xf]  ;;  %v2542_v56 = vld [vmem:[%s3590_s8 + $0x254] sm:$0xf0]  ;;  %v1807_v60 = vor.u32 %v2479_v48, %v1804_v49 }
  0x2c   :  { %738 = vmatpush.bf16.msra.mxu1 %v1827_v19  ;;  %v2114_v57 = vld [vmem:[%s3590_s8 + $0x2d0] sm:$0xf]  ;;  %v2558_v61 = vld [vmem:[%s3590_s8 + $0x2d4] sm:$0xf0]  ;;  %v2477_v62 = vld [vmem:[%s3590_s8 + $0x54] sm:$0xf]  ;;  %v1871_v0 = vor.u32 %v2495_v50, %v1868_v51  ;;  %v2051_v8 = vor.u32 %v2542_v56, %v2050_v55 }
  0x2d   :  { %752 = vmatpush.bf16.msra.mxu2 %v1891_v20  ;;  %v1796_v63 = vld [vmem:[%s3590_s8 + $0x58] sm:$0xf0]  ;;  %v2493_v1 = vld [vmem:[%s3590_s8 + $0xd4] sm:$0xf]  ;;  %v2042_v9 = vld [vmem:[%s3590_s8 + $0x240] sm:$0xf]  ;;  %v2115_v12 = vor.u32 %v2558_v61, %v2114_v57 }
  0x2e   :  { %766 = vmatpush.bf16.msra.mxu3 %v1955_v24  ;;  %v1860_v4 = vld [vmem:[%s3590_s8 + $0xd8] sm:$0xf0]  ;;  %v2540_v10 = vld [vmem:[%s3590_s8 + $0x244] sm:$0xf0]  ;;  %v1799_v13 = vor.u32 %v2477_v62, %v1796_v63  ;;  %v2106_v14 = vld [vmem:[%s3590_s8 + $0x2c0] sm:$0xf] }
  0x2f   :  { %725 = vmatpush.bf16.msra.mxu0 %v1755_v31  ;;  %v2556_v15 = vld [vmem:[%s3590_s8 + $0x2c4] sm:$0xf0]  ;;  %v2475_v16 = vld [vmem:[%s3590_s8 + $0x44] sm:$0xf]  ;;  %v1863_v17 = vor.u32 %v2493_v1, %v1860_v4  ;;  %v1788_v18 = vld [vmem:[%s3590_s8 + $0x48] sm:$0xf0]  ;;  %v2043_v24 = vor.u32 %v2540_v10, %v2042_v9 }
  0x30   :  { %739 = vmatpush.bf16.msra.mxu1 %v1819_v35  ;;  %v1730_v52 = vld [vmem:[%s3601_s10] sm:$0xf]  ;;  %v2464_v53 = vld [vmem:[%s3601_s10 + $0x14] sm:$0xf0]  ;;  %v2461_v2 = vld [vmem:[%s3601_s10 + $0x4] sm:$0xf]  ;;  %v2107_v25 = vor.u32 %v2556_v15, %v2106_v14  ;;  %v1791_v26 = vor.u32 %v2475_v16, %v1788_v18 }
  0x31   :  { %753 = vmatpush.bf16.msra.mxu2 %v1883_v36  ;;  %v3090_v58 = vor.u32 %v2464_v53, %v1730_v52  ;;  %v1732_v3 = vld [vmem:[%s3601_s10 + $0x18] sm:$0xf0]  ;;  %v1738_v6 = vld [vmem:[%s3601_s10 + $0x8] sm:$0xf]  ;;  %v2465_v7 = vld [vmem:[%s3601_s10 + $0x1c] sm:$0xf0] }
  0x32   :  { %767 = vmatpush.bf16.msra.mxu3 %v1947_v39  ;;  %v3114_v5 = vor.u32 %v2461_v2, %v1732_v3  ;;  %v3128_v11 = vor.u32 %v2465_v7, %v1738_v6  ;;  %v2462_v19 = vld [vmem:[%s3601_s10 + $0xc] sm:$0xf]  ;;  %v1740_v20 = vld [vmem:[%s3601_s10 + $0x20] sm:$0xf0]  ;;  %v2034_v27 = vld [vmem:[%s3590_s8 + $0x230] sm:$0xf] }
  0x33   :  { %774 = vmatpush.bf16.msrb.mxu0 %v2067_v40  ;;  %v2491_v21 = vld [vmem:[%s3590_s8 + $0xc4] sm:$0xf]  ;;  %v1852_v22 = vld [vmem:[%s3590_s8 + $0xc8] sm:$0xf0]  ;;  %v3156_v23 = vor.u32 %v2462_v19, %v1740_v20  ;;  %v2538_v28 = vld [vmem:[%s3590_s8 + $0x234] sm:$0xf0] }
  0x34   :  { %788 = vmatpush.bf16.msrb.mxu1 %v2131_v42  ;;  %726 = vmatmul.bf16.vlgmr.msra.gmra.mxu0 %v3090_v58  ;;  %v2098_v29 = vld [vmem:[%s3590_s8 + $0x2b0] sm:$0xf]  ;;  %v1855_v30 = vor.u32 %v2491_v21, %v1852_v22  ;;  %v2554_v31 = vld [vmem:[%s3590_s8 + $0x2b4] sm:$0xf0]  ;;  %v2473_v32 = vld [vmem:[%s3590_s8 + $0x34] sm:$0xf]  ;;  %v2035_v36 = vor.u32 %v2538_v28, %v2034_v27 }
  0x35   :  { %802 = vmatpush.bf16.msrb.mxu2 %v1815_v43  ;;  %740 = vmatmul.bf16.vlgmr.msra.gmra.mxu1 %v3114_v5  ;;  %v1780_v33 = vld [vmem:[%s3590_s8 + $0x38] sm:$0xf0]  ;;  %v2489_v34 = vld [vmem:[%s3590_s8 + $0xb4] sm:$0xf]  ;;  %v2099_v37 = vor.u32 %v2554_v31, %v2098_v29  ;;  %v2026_v39 = vld [vmem:[%s3590_s8 + $0x220] sm:$0xf] }
  0x36   :  { %816 = vmatpush.bf16.msrb.mxu3 %v1879_v47  ;;  %754 = vmatmul.bf16.vlgmr.msra.gmra.mxu2 %v3128_v11  ;;  %v1844_v35 = vld [vmem:[%s3590_s8 + $0xb8] sm:$0xf0]  ;;  %v1783_v38 = vor.u32 %v2473_v32, %v1780_v33  ;;  %v2536_v40 = vld [vmem:[%s3590_s8 + $0x224] sm:$0xf0]  ;;  %v2090_v41 = vld [vmem:[%s3590_s8 + $0x2a0] sm:$0xf] }
  0x37   :  { %775 = vmatpush.bf16.msrb.mxu0 %v2059_v54  ;;  %768 = vmatmul.bf16.vlgmr.msra.gmra.mxu3 %v3156_v23  ;;  %v1847_v42 = vor.u32 %v2489_v34, %v1844_v35  ;;  %v2552_v43 = vld [vmem:[%s3590_s8 + $0x2a4] sm:$0xf0]  ;;  %v2471_v44 = vld [vmem:[%s3590_s8 + $0x24] sm:$0xf]  ;;  %v1772_v45 = vld [vmem:[%s3590_s8 + $0x28] sm:$0xf0]  ;;  %v2027_v48 = vor.u32 %v2536_v40, %v2026_v39 }
  0x38   :  { %789 = vmatpush.bf16.msrb.mxu1 %v2123_v59  ;;  %v2487_v46 = vld [vmem:[%s3590_s8 + $0xa4] sm:$0xf]  ;;  %v1836_v47 = vld [vmem:[%s3590_s8 + $0xa8] sm:$0xf0]  ;;  %v2091_v49 = vor.u32 %v2552_v43, %v2090_v41  ;;  %v1775_v50 = vor.u32 %v2471_v44, %v1772_v45  ;;  %v2018_v51 = vld [vmem:[%s3590_s8 + $0x210] sm:$0xf] }
  0x39   :  { %803 = vmatpush.bf16.msrb.mxu2 %v1807_v60  ;;  %v2534_v52 = vld [vmem:[%s3590_s8 + $0x214] sm:$0xf0]  ;;  %v2082_v53 = vld [vmem:[%s3590_s8 + $0x290] sm:$0xf]  ;;  %v1839_v54 = vor.u32 %v2487_v46, %v1836_v47  ;;  %v2469_v56 = vld [vmem:[%s3590_s8 + $0x14] sm:$0xf] }
  0x3a   :  { %817 = vmatpush.bf16.msrb.mxu3 %v1871_v0  ;;  %v2550_v55 = vld [vmem:[%s3590_s8 + $0x294] sm:$0xf0]  ;;  %v1764_v57 = vld [vmem:[%s3590_s8 + $0x18] sm:$0xf0]  ;;  %v2485_v59 = vld [vmem:[%s3590_s8 + $0x94] sm:$0xf]  ;;  %v2019_v61 = vor.u32 %v2534_v52, %v2018_v51 }
  0x3b   :  { %776 = vmatpush.bf16.msrb.mxu0 %v2051_v8  ;;  %v1828_v60 = vld [vmem:[%s3590_s8 + $0x98] sm:$0xf0]  ;;  %v2010_v62 = vld [vmem:[%s3590_s8 + $0x200] sm:$0xf]  ;;  %v2532_v63 = vld [vmem:[%s3590_s8 + $0x204] sm:$0xf0]  ;;  %v2083_v1 = vor.u32 %v2550_v55, %v2082_v53  ;;  %v1767_v2 = vor.u32 %v2469_v56, %v1764_v57 }
  0x3c   :  { %790 = vmatpush.bf16.msrb.mxu1 %v2115_v12  ;;  %v2074_v0 = vld [vmem:[%s3590_s8 + $0x280] sm:$0xf]  ;;  %v2548_v3 = vld [vmem:[%s3590_s8 + $0x284] sm:$0xf0]  ;;  %v2467_v4 = vld [vmem:[%s3590_s8 + $0x4] sm:$0xf]  ;;  %v1831_v7 = vor.u32 %v2485_v59, %v1828_v60  ;;  %v2011_v15 = vor.u32 %v2532_v63, %v2010_v62 }
  0x3d   :  { %804 = vmatpush.bf16.msrb.mxu2 %v1799_v13  ;;  %v1756_v6 = vld [vmem:[%s3590_s8 + $0x8] sm:$0xf0]  ;;  %v2483_v8 = vld [vmem:[%s3590_s8 + $0x84] sm:$0xf]  ;;  %v2513_v10 = vld [vmem:[%s3590_s8 + $0x174] sm:$0xf]  ;;  %v2075_v19 = vor.u32 %v2548_v3, %v2074_v0 }
  0x3e   :  { %818 = vmatpush.bf16.msrb.mxu3 %v1863_v17  ;;  %v1820_v9 = vld [vmem:[%s3590_s8 + $0x88] sm:$0xf0]  ;;  %v1940_v12 = vld [vmem:[%s3590_s8 + $0x178] sm:$0xf0]  ;;  %v2529_v13 = vld [vmem:[%s3590_s8 + $0x1f4] sm:$0xf]  ;;  %v1759_v20 = vor.u32 %v2467_v4, %v1756_v6 }
  0x3f   :  { %777 = vmatpush.bf16.msrb.mxu0 %v2043_v24  ;;  %v2004_v14 = vld [vmem:[%s3590_s8 + $0x1f8] sm:$0xf0]  ;;  %v2545_v16 = vld [vmem:[%s3590_s8 + $0x274] sm:$0xf]  ;;  %v1746_v22 = vld [vmem:[%s3601_s10 + $0x10] sm:$0xf] }
  0x40   :  { %791 = vmatpush.bf16.msrb.mxu1 %v2107_v25  ;;  %v2068_v17 = vld [vmem:[%s3590_s8 + $0x278] sm:$0xf0]  ;;  %v2561_v18 = vld [vmem:[%s3590_s8 + $0x2f4] sm:$0xf]  ;;  %v2466_v24 = vld [vmem:[%s3601_s10 + $0x24] sm:$0xf0]  ;;  %v1823_v25 = vor.u32 %v2483_v8, %v1820_v9  ;;  %v2007_v29 = vor.u32 %v2529_v13, %v2004_v14 }
  0x41   :  { %805 = vmatpush.bf16.msrb.mxu2 %v1791_v26  ;;  %v2132_v21 = vld [vmem:[%s3590_s8 + $0x2f8] sm:$0xf0]  ;;  %v1943_v26 = vor.u32 %v2513_v10, %v1940_v12  ;;  %v2463_v27 = vld [vmem:[%s3601_s10 + $0x14] sm:$0xf]  ;;  %v1748_v28 = vld [vmem:[%s3601_s10 + $0x28] sm:$0xf0]  ;;  %v3300_v35 = vor.u32 %v2466_v24, %v1746_v22 }
  0x42   :  { %819 = vmatpush.bf16.msrb.mxu3 %v1855_v30  ;;  %v2071_v30 = vor.u32 %v2545_v16, %v2068_v17  ;;  %v2511_v31 = vld [vmem:[%s3590_s8 + $0x164] sm:$0xf]  ;;  %v1932_v32 = vld [vmem:[%s3590_s8 + $0x168] sm:$0xf0]  ;;  %v2135_v34 = vor.u32 %v2561_v18, %v2132_v21  ;;  %v3311_v39 = vor.u32 %v2463_v27, %v1748_v28  ;;  %v2509_v45 = vld [vmem:[%s3590_s8 + $0x154] sm:$0xf] }
  0x43   :  { %778 = vmatpush.bf16.msrb.mxu0 %v2035_v36  ;;  %v2527_v33 = vld [vmem:[%s3590_s8 + $0x1e4] sm:$0xf]  ;;  %v1996_v36 = vld [vmem:[%s3590_s8 + $0x1e8] sm:$0xf0]  ;;  %v1924_v46 = vld [vmem:[%s3590_s8 + $0x158] sm:$0xf0] }
  0x44   :  { %792 = vmatpush.bf16.msrb.mxu1 %v2099_v37  ;;  %v2543_v37 = vld [vmem:[%s3590_s8 + $0x264] sm:$0xf]  ;;  %v2124_v41 = vld [vmem:[%s3590_s8 + $0x2e8] sm:$0xf0]  ;;  %v1999_v43 = vor.u32 %v2527_v33, %v1996_v36  ;;  %v2525_v47 = vld [vmem:[%s3590_s8 + $0x1d4] sm:$0xf] }
  0x45   :  { %806 = vmatpush.bf16.msrb.mxu2 %v1783_v38  ;;  %v2060_v38 = vld [vmem:[%s3590_s8 + $0x268] sm:$0xf0]  ;;  %v2559_v40 = vld [vmem:[%s3590_s8 + $0x2e4] sm:$0xf]  ;;  %v2052_v51 = vld [vmem:[%s3590_s8 + $0x258] sm:$0xf0] }
  0x46   :  { %820 = vmatpush.bf16.msrb.mxu3 %v1847_v42  ;;  %v1935_v42 = vor.u32 %v2511_v31, %v1932_v32  ;;  %v2063_v44 = vor.u32 %v2543_v37, %v2060_v38  ;;  %v2557_v52 = vld [vmem:[%s3590_s8 + $0x2d4] sm:$0xf]  ;;  %v2116_v53 = vld [vmem:[%s3590_s8 + $0x2d8] sm:$0xf0]  ;;  %v2507_v55 = vld [vmem:[%s3590_s8 + $0x144] sm:$0xf] }
  0x47   :  { %779 = vmatpush.bf16.msrb.mxu0 %v2027_v48  ;;  %v2127_v48 = vor.u32 %v2559_v40, %v2124_v41  ;;  %v1916_v57 = vld [vmem:[%s3590_s8 + $0x148] sm:$0xf0]  ;;  %v2523_v59 = vld [vmem:[%s3590_s8 + $0x1c4] sm:$0xf]  ;;  %v2119_v60 = vor.u32 %v2557_v52, %v2116_v53  ;;  %v2505_v4 = vld [vmem:[%s3590_s8 + $0x134] sm:$0xf] }
  0x48   :  { %793 = vmatpush.bf16.msrb.mxu1 %v2091_v49  ;;  %v1988_v49 = vld [vmem:[%s3590_s8 + $0x1d8] sm:$0xf0]  ;;  %v2044_v62 = vld [vmem:[%s3590_s8 + $0x248] sm:$0xf0]  ;;  %v2555_v63 = vld [vmem:[%s3590_s8 + $0x2c4] sm:$0xf] }
  0x49   :  { %807 = vmatpush.bf16.msrb.mxu2 %v1775_v50  ;;  %v2541_v50 = vld [vmem:[%s3590_s8 + $0x254] sm:$0xf]  ;;  %v1991_v56 = vor.u32 %v2525_v47, %v1988_v49  ;;  %v2108_v0 = vld [vmem:[%s3590_s8 + $0x2c8] sm:$0xf0]  ;;  %v1908_v6 = vld [vmem:[%s3590_s8 + $0x138] sm:$0xf0] }
  0x4a   :  { %821 = vmatpush.bf16.msrb.mxu3 %v1839_v54  ;;  %v1927_v54 = vor.u32 %v2509_v45, %v1924_v46  ;;  %v2111_v8 = vor.u32 %v2555_v63, %v2108_v0  ;;  %v1972_v9 = vld [vmem:[%s3590_s8 + $0x1b8] sm:$0xf0]  ;;  %v2537_v10 = vld [vmem:[%s3590_s8 + $0x234] sm:$0xf]  ;;  %v2503_v18 = vld [vmem:[%s3590_s8 + $0x124] sm:$0xf] }
  0x4b   :  { %780 = vmatpush.bf16.msrb.mxu0 %v2019_v61  ;;  %v2539_v61 = vld [vmem:[%s3590_s8 + $0x244] sm:$0xf]  ;;  %v2036_v12 = vld [vmem:[%s3590_s8 + $0x238] sm:$0xf0]  ;;  %v2553_v13 = vld [vmem:[%s3590_s8 + $0x2b4] sm:$0xf] }
  0x4c   :  { %794 = vmatpush.bf16.msrb.mxu1 %v2083_v1  ;;  %v1919_v1 = vor.u32 %v2507_v55, %v1916_v57  ;;  %v2047_v3 = vor.u32 %v2539_v61, %v2044_v62  ;;  %v2100_v14 = vld [vmem:[%s3590_s8 + $0x2b8] sm:$0xf0]  ;;  %v2039_v17 = vor.u32 %v2537_v10, %v2036_v12  ;;  %v1964_v22 = vld [vmem:[%s3590_s8 + $0x1a8] sm:$0xf0]  ;;  %v2535_v24 = vld [vmem:[%s3590_s8 + $0x224] sm:$0xf] }
  0x4d   :  { %808 = vmatpush.bf16.msrb.mxu2 %v1767_v2  ;;  %v2103_v21 = vor.u32 %v2553_v13, %v2100_v14  ;;  %v2092_v27 = vld [vmem:[%s3590_s8 + $0x2a8] sm:$0xf0]  ;;  %v2501_v31 = vld [vmem:[%s3590_s8 + $0x114] sm:$0xf]  ;;  %v1892_v32 = vld [vmem:[%s3590_s8 + $0x118] sm:$0xf0] }
  0x4e   :  { %822 = vmatpush.bf16.msrb.mxu3 %v1831_v7  ;;  %v2521_v7 = vld [vmem:[%s3590_s8 + $0x1b4] sm:$0xf]  ;;  %v1956_v36 = vld [vmem:[%s3590_s8 + $0x198] sm:$0xf0]  ;;  %v2499_v45 = vld [vmem:[%s3590_s8 + $0x104] sm:$0xf] }
  0x4f   :  { %781 = vmatpush.bf16.msrb.mxu0 %v2011_v15  ;;  %v1911_v15 = vor.u32 %v2505_v4, %v1908_v6  ;;  %v1975_v16 = vor.u32 %v2521_v7, %v1972_v9  ;;  %v2517_v33 = vld [vmem:[%s3590_s8 + $0x194] sm:$0xf]  ;;  %v2020_v38 = vld [vmem:[%s3590_s8 + $0x218] sm:$0xf0]  ;;  %v1884_v46 = vld [vmem:[%s3590_s8 + $0x108] sm:$0xf0] }
  0x50   :  { %795 = vmatpush.bf16.msrb.mxu1 %v2075_v19  ;;  %v1900_v19 = vld [vmem:[%s3590_s8 + $0x128] sm:$0xf0]  ;;  %v2533_v37 = vld [vmem:[%s3590_s8 + $0x214] sm:$0xf]  ;;  %v2084_v41 = vld [vmem:[%s3590_s8 + $0x298] sm:$0xf0] }
  0x51   :  { %809 = vmatpush.bf16.msrb.mxu2 %v1759_v20  ;;  %v2519_v20 = vld [vmem:[%s3590_s8 + $0x1a4] sm:$0xf]  ;;  %v1903_v28 = vor.u32 %v2503_v18, %v1900_v19  ;;  %v2549_v40 = vld [vmem:[%s3590_s8 + $0x294] sm:$0xf]  ;;  %v1948_v49 = vld [vmem:[%s3590_s8 + $0x188] sm:$0xf0] }
  0x52   :  { %823 = vmatpush.bf16.msrb.mxu3 %v1823_v25  ;;  %782 = vmatmul.bf16.vlgmr.msrb.gmra.mxu0 %v3300_v35  ;;  %v2028_v25 = vld [vmem:[%s3590_s8 + $0x228] sm:$0xf0]  ;;  %v2515_v47 = vld [vmem:[%s3590_s8 + $0x184] sm:$0xf]  ;;  %v900_v13 = vld [vmem:[%s3583_s1 + $0x30] sm:$0xff]  ;;  %vm972_vm1 = vcmask 261120  }
  0x53   :  { %830 = vmatpush.bf16.msra.mxu0 %v1943_v26  ;;  %796 = vmatmul.bf16.vlgmr.msrb.gmra.mxu1 %v3311_v39  ;;  %v2551_v26 = vld [vmem:[%s3590_s8 + $0x2a4] sm:$0xf]  ;;  %v2076_v53 = vld [vmem:[%s3590_s8 + $0x288] sm:$0xf0]  ;;  %v1951_v55 = vor.u32 %v2515_v47, %v1948_v49  ;;  %v2198_v49 = vld [vmem:[#allocation2 + $0x70] sm:$0xf] }
  0x54   :  { %844 = vmatpush.bf16.msra.mxu1 %v2007_v29  ;;  %810 = vmatmul.bf16.vlgmr.msrb.gmra.mxu2 %v3090_v58  ;;  %v2055_v58 = vor.u32 %v2541_v50, %v2052_v51  ;;  %v1967_v29 = vor.u32 %v2519_v20, %v1964_v22  ;;  %v2531_v50 = vld [vmem:[%s3590_s8 + $0x204] sm:$0xf]  ;;  %v2012_v51 = vld [vmem:[%s3590_s8 + $0x208] sm:$0xf0]  ;;  %v908_v20 = vmul.f32 3.0, %v900_v13  ;;  %v916_v22 = vld [vmem:[%s3585_s3 + $0x30] sm:$0xff] }
  0x55   :  { %858 = vmatpush.bf16.msra.mxu2 %v2071_v30  ;;  %824 = vmatmul.bf16.vlgmr.msrb.gmra.mxu3 %v3114_v5  ;;  %v1980_v5 = vld [vmem:[%s3590_s8 + $0x1c8] sm:$0xf0]  ;;  %v2031_v30 = vor.u32 %v2535_v24, %v2028_v25  ;;  %v2547_v52 = vld [vmem:[%s3590_s8 + $0x284] sm:$0xf]  ;;  %v896_v24 = vld [vmem:[%s3583_s1 + $0x10] sm:$0xff] }
  0x56   :  { %872 = vmatpush.bf16.msra.mxu3 %v2135_v34  ;;  %v1983_v2 = vor.u32 %v2523_v59, %v1980_v5  ;;  %v2095_v34 = vor.u32 %v2551_v26, %v2092_v27  ;;  %v914_v27 = vld [vmem:[%s3585_s3 + $0x20] sm:$0xff] }
  0x57   :  { %831 = vmatpush.bf16.msra.mxu0 %v1935_v42  ;;  %v1895_v42 = vor.u32 %v2501_v31, %v1892_v32  ;;  %v924_v31 = vadd.f32 %v916_v22, %v908_v20  ;;  %v904_v32 = vmul.f32 3.0, %v896_v24  ;;  %v2174_v20 = vld [vmem:[#allocation2 + $0x40] sm:$0xf]  ;;  %v2571_v22 = vld [vmem:[#allocation2 + $0x44] sm:$0xf] }
  0x58   :  { %845 = vmatpush.bf16.msra.mxu1 %v1999_v43  ;;  %v1959_v43 = vor.u32 %v2517_v33, %v1956_v36  ;;  %v912_v33 = vld [vmem:[%s3585_s3 + $0x10] sm:$0xff]  ;;  %v2176_v24 = vld [vmem:[#allocation2 + $0x48] sm:$0xf0] }
  0x59   :  { %859 = vmatpush.bf16.msra.mxu2 %v2063_v44  ;;  %v2023_v44 = vor.u32 %v2533_v37, %v2020_v38  ;;  %v910_v38 = vld [vmem:[%s3585_s3] sm:$0xff] }
  0x5a   :  { %873 = vmatpush.bf16.msra.mxu3 %v2127_v48  ;;  %v2087_v48 = vor.u32 %v2549_v40, %v2084_v41  ;;  %v920_v41 = vadd.f32 %v912_v33, %v904_v32 }
  0x5b   :  { %832 = vmatpush.bf16.msra.mxu0 %v1927_v54  ;;  %v1887_v54 = vor.u32 %v2499_v45, %v1884_v46 }
  0x5c   :  { %846 = vmatpush.bf16.msra.mxu1 %v1991_v56  ;;  %v2015_v56 = vor.u32 %v2531_v50, %v2012_v51  ;;  %v2578_v50 = vld [vmem:[#allocation2 + $0x74] sm:$0xf0] }
  0x5d   :  { %860 = vmatpush.bf16.msra.mxu2 %v2055_v58  ;;  %v2079_v58 = vor.u32 %v2547_v52, %v2076_v53  ;;  %v2740_v52 = vmov 0   ;;  %v2199_v53 = vor.u32 %v2578_v50, %v2198_v49  ;;  %v897_v49 = vld [vmem:[%s3583_s1 + $0x18] sm:$0xff] }
  0x5e   :  { %874 = vmatpush.bf16.msra.mxu3 %v2119_v60  ;;  %v3474_v60 = vld [vmem:[%s3591_s9] sm:$0x3]  ;;  %2651 = vset.pattern.permute.xlu0 %v2740_v52  ;;  %v915_v52 = vld [vmem:[%s3585_s3 + $0x28] sm:$0xff] }
  0x5f   :  { %833 = vmatpush.bf16.msra.mxu0 %v1919_v1  ;;  %v204_v5 = vperm.slane %v3474_v60, 0 }
  0x60   :  { %847 = vmatpush.bf16.msra.mxu1 %v1983_v2 }
  0x61   :  { %861 = vmatpush.bf16.msra.mxu2 %v2047_v3 }
  0x62   :  { %875 = vmatpush.bf16.msra.mxu3 %v2111_v8 }
  0x63   :  { %834 = vmatpush.bf16.msra.mxu0 %v1911_v15 }
  0x64   :  { %848 = vmatpush.bf16.msra.mxu1 %v1975_v16  ;;  %v888_v16 = vld [vmem:[%s3584_s2 + $0x10] sm:$0xff] }
  0x65   :  { %862 = vmatpush.bf16.msra.mxu2 %v2039_v17  ;;  %v898_v17 = vld [vmem:[%s3583_s1 + $0x20] sm:$0xff] }
  0x66   :  { %876 = vmatpush.bf16.msra.mxu3 %v2103_v21  ;;  %v886_v21 = vld [vmem:[%s3584_s2] sm:$0xff]  ;;  %v906_v26 = vmul.f32 3.0, %v898_v17 }
  0x67   :  { %835 = vmatpush.bf16.msra.mxu0 %v1903_v28  ;;  %v894_v28 = vld [vmem:[%s3583_s1] sm:$0xff] }
  0x68   :  { %849 = vmatpush.bf16.msra.mxu1 %v1967_v29  ;;  %v902_v36 = vmul.f32 3.0, %v894_v28 }
  0x69   :  { %863 = vmatpush.bf16.msra.mxu2 %v2031_v30  ;;  %v3504_v30 = vld [vmem:[%s3586_s4] sm:$0xff] }
  0x6a   :  { %877 = vmatpush.bf16.msra.mxu3 %v2095_v34  ;;  %v922_v34 = vadd.f32 %v914_v27, %v906_v26  ;;  %v2588_v26 = vld [vmem:[#allocation2 + $0xc4] sm:$0xf0] }
  0x6b   :  { %836 = vmatpush.bf16.msra.mxu0 %v1895_v42  ;;  %v918_v42 = vadd.f32 %v910_v38, %v902_v36 }
  0x6c   :  { %850 = vmatpush.bf16.msra.mxu1 %v1959_v43  ;;  %v3517_v43 = vld [vmem:[%s3587_s5] sm:$0xff] }
  0x6d   :  { %864 = vmatpush.bf16.msra.mxu2 %v2023_v44  ;;  %v205_v44 = vperm.slane %v3474_v60, 1 }
  0x6e   :  { %878 = vmatpush.bf16.msra.mxu3 %v2087_v48  ;;  %v1026_v48 = vld [vmem:[%s3588_s6] sm:$0xff] }
  0x6f   :  { %837 = vmatpush.bf16.msra.mxu0 %v1887_v54  ;;  %v2577_v54 = vld [vmem:[#allocation2 + $0x74] sm:$0xf]  ;;  %1029 = vperm.xlu0 %2651, %v1026_v48   ;;  %v917_v48 = vld [vmem:[%s3585_s3 + $0x38] sm:$0xff] }
  0x70   :  { %851 = vmatpush.bf16.msra.mxu1 %v1951_v55  ;;  %v2200_v55 = vld [vmem:[#allocation2 + $0x78] sm:$0xf0] }
  0x71   :  { %865 = vmatpush.bf16.msra.mxu2 %v2015_v56  ;;  %v2262_v56 = vld [vmem:[#allocation2 + $0xf0] sm:$0xf] }
  0x72   :  { %879 = vmatpush.bf16.msra.mxu3 %v2079_v58  ;;  %838 = vmatmul.bf16.vlgmr.msra.gmra.mxu0 %v3128_v11 }
  0x73   :  { %852 = vmatmul.bf16.vlgmr.msra.gmra.mxu1 %v3156_v23  ;;  %1234 = vmatpush.bf16.msrb.mxu0 %v2199_v53  ;;  %v895_v53 = vld [vmem:[%s3583_s1 + $0x8] sm:$0xff] }
  0x74   :  { %866 = vmatmul.bf16.vlgmr.msra.gmra.mxu2 %v3300_v35 }
  0x75   :  { %880 = vmatmul.bf16.vlgmr.msra.gmra.mxu3 %v3311_v39 }
  0xb1   :  { %v727_v57 = vpop.f32.mrf.mxu0 }
  0xb2   :  { %v741_v59 = vpop.f32.mrf.mxu1  ;;  %v728_v63 = vadd.f32 %v727_v57, %v204_v5  ;;  %v2203_v57 = vor.u32 %v2577_v54, %v2200_v55 }
  0xb4   :  { %v742_v23 = vadd.f32 %v741_v59, %v728_v63  ;;  %v2594_v59 = vld [vmem:[#allocation2 + $0xf4] sm:$0xf0]  ;;  %v2575_v63 = vld [vmem:[#allocation2 + $0x64] sm:$0xf] }
  0xb9   :  { %v755_v61 = vpop.f32.mrf.mxu2  ;;  %v729_v62 = vpop.f32.mrf.mxu0 }
  0xba   :  { %v743_v0 = vpop.f32.mrf.mxu1  ;;  %v769_v11 = vpop.f32.mrf.mxu3  ;;  %v730_v1 = vadd.f32 %v729_v62, %v204_v5  ;;  %v756_v3 = vadd.f32 %v755_v61, %v742_v23  ;;  %v2263_v5 = vor.u32 %v2594_v59, %v2262_v56  ;;  %v2190_v61 = vld [vmem:[#allocation2 + $0x60] sm:$0xf]  ;;  %v2576_v62 = vld [vmem:[#allocation2 + $0x64] sm:$0xf0]  ;;  %v905_v56 = vmul.f32 3.0, %v897_v49 }
  0xbb   :  { %v2592_v23 = vld [vmem:[#allocation2 + $0xe4] sm:$0xf0]  ;;  %v903_v59 = vmul.f32 3.0, %v895_v53  ;;  %v2224_v49 = vld [vmem:[#allocation2 + $0xa8] sm:$0xf0] }
  0xbc   :  { %v744_v2 = vadd.f32 %v743_v0, %v730_v1  ;;  %v770_v8 = vadd.f32 %v769_v11, %v756_v3  ;;  %v2191_v0 = vor.u32 %v2576_v62, %v2190_v61  ;;  %v2192_v11 = vld [vmem:[#allocation2 + $0x68] sm:$0xf0]  ;;  %v2254_v1 = vld [vmem:[#allocation2 + $0xe0] sm:$0xf]  ;;  %1247 = vmatpush.bf16.msrb.mxu1 %v2263_v5  ;;  %v2593_v61 = vld [vmem:[#allocation2 + $0xf4] sm:$0xf] }
  0xbd   :  { %v2255_v3 = vor.u32 %v2592_v23, %v2254_v1  ;;  %v2264_v62 = vld [vmem:[#allocation2 + $0xf8] sm:$0xf0]  ;;  %v2256_v1 = vld [vmem:[#allocation2 + $0xe8] sm:$0xf0]  ;;  %v2589_v23 = vld [vmem:[#allocation2 + $0xd4] sm:$0xf] }
  0xbe   :  { %1235 = vmatpush.bf16.msrb.mxu0 %v2191_v0  ;;  %v2267_v0 = vor.u32 %v2593_v61, %v2264_v62  ;;  %v2206_v61 = vld [vmem:[#allocation2 + $0x80] sm:$0xf]  ;;  %v2580_v62 = vld [vmem:[#allocation2 + $0x84] sm:$0xf0] }
  0xc0   :  { %1248 = vmatpush.bf16.msrb.mxu1 %v2255_v3  ;;  %v2587_v3 = vld [vmem:[#allocation2 + $0xc4] sm:$0xf] }
  0xc1   :  { %v757_v35 = vpop.f32.mrf.mxu2 }
  0xc2   :  { %v758_v6 = vadd.f32 %v757_v35, %v744_v2  ;;  %v771_v7 = vpop.f32.mrf.mxu3  ;;  %v2195_v35 = vor.u32 %v2575_v63, %v2192_v11  ;;  %v2591_v11 = vld [vmem:[#allocation2 + $0xe4] sm:$0xf] }
  0xc4   :  { %v772_v9 = vadd.f32 %v771_v7, %v758_v6  ;;  %v2574_v6 = vld [vmem:[#allocation2 + $0x54] sm:$0xf0]  ;;  %v2573_v7 = vld [vmem:[#allocation2 + $0x54] sm:$0xf] }
  0xcf   :  { %v783_v39 = vpop.f32.mrf.mxu0 }
  0xd0   :  { %v797_v4 = vpop.f32.mrf.mxu1  ;;  %v784_v10 = vadd.f32 %v783_v39, %v770_v8  ;;  %v2182_v39 = vld [vmem:[#allocation2 + $0x50] sm:$0xf]  ;;  %v2184_v8 = vld [vmem:[#allocation2 + $0x58] sm:$0xf0] }
  0xd1   :  { %v2187_v17 = vor.u32 %v2573_v7, %v2184_v8  ;;  %v2570_v7 = vld [vmem:[#allocation2 + $0x34] sm:$0xf0] }
  0xd2   :  { %v798_v18 = vadd.f32 %v797_v4, %v784_v10 }
  0xd4   :  { %v890_v29 = vadd.f32 %v886_v21, %v798_v18  ;;  %v2572_v21 = vld [vmem:[#allocation2 + $0x44] sm:$0xf0] }
  0xd5   :  { %v2175_v28 = vor.u32 %v2572_v21, %v2174_v20  ;;  %v2565_v20 = vld [vmem:[#allocation2 + $0x14] sm:$0xf] }
  0xd7   :  { %v785_v12 = vpop.f32.mrf.mxu0  ;;  %v811_v37 = vpop.f32.mrf.mxu2 }
  0xd8   :  { %v786_v14 = vadd.f32 %v785_v12, %v772_v9  ;;  %v799_v15 = vpop.f32.mrf.mxu1  ;;  %v825_v40 = vpop.f32.mrf.mxu3  ;;  %v812_v51 = vadd.f32 %v811_v37, %v205_v44  ;;  %v901_v37 = vld [vmem:[%s3583_s1 + $0x38] sm:$0xff] }
  0xda   :  { %v800_v19 = vadd.f32 %v799_v15, %v786_v14  ;;  %v826_v2 = vadd.f32 %v825_v40, %v812_v51  ;;  %v2183_v14 = vor.u32 %v2574_v6, %v2182_v39  ;;  %v2246_v15 = vld [vmem:[#allocation2 + $0xd0] sm:$0xf]  ;;  %v2240_v39 = vld [vmem:[#allocation2 + $0xc8] sm:$0xf0] }
  0xdb   :  { %v2166_v6 = vld [vmem:[#allocation2 + $0x30] sm:$0xf] }
  0xdc   :  { %v892_v25 = vadd.f32 %v888_v16, %v800_v19  ;;  %v2590_v16 = vld [vmem:[#allocation2 + $0xd4] sm:$0xf0]  ;;  %1236 = vmatpush.bf16.msrb.mxu0 %v2183_v14  ;;  %v2167_v8 = vor.u32 %v2570_v7, %v2166_v6  ;;  %v2567_v14 = vld [vmem:[#allocation2 + $0x24] sm:$0xf] }
  0xdd   :  { %v2247_v19 = vor.u32 %v2590_v16, %v2246_v15  ;;  %v2160_v16 = vld [vmem:[#allocation2 + $0x28] sm:$0xf0]  ;;  %v2607_v7 = vld [vmem:[#allocation4 + $0x64] sm:$0xf] }
  0xde   :  { %945 = vmatpush.msrb.mxu2 %v892_v25  ;;  %v2238_v25 = vld [vmem:[#allocation2 + $0xc0] sm:$0xf] }
  0xdf   :  { %v813_v45 = vpop.f32.mrf.mxu2  ;;  %1249 = vmatpush.bf16.msrb.mxu1 %v2247_v19  ;;  %v2566_v19 = vld [vmem:[#allocation2 + $0x14] sm:$0xf0] }
  0xe0   :  { %946 = vmatpush.msrb.mxu2 %v890_v29  ;;  %v827_v46 = vpop.f32.mrf.mxu3  ;;  %v814_v60 = vadd.f32 %v813_v45, %v205_v44  ;;  %1237 = vmatpush.bf16.msrb.mxu0 %v2175_v28  ;;  %v2563_v28 = vld [vmem:[#allocation2 + $0x4] sm:$0xf] }
  0xe1   :  { %2136 = vmatmul.msk.f32.vlgmr.msrb.gmra.mxu2 %vm927_vm0, %v3504_v30 }
  0xe2   :  { %988 = vmatpush.msra.mxu2 %v924_v31  ;;  %v828_v9 = vadd.f32 %v827_v46, %v814_v60  ;;  %v2179_v31 = vor.u32 %v2571_v22, %v2176_v24  ;;  %v909_v46 = vmul.f32 3.0, %v901_v37  ;;  %v911_v60 = vld [vmem:[%s3585_s3 + $0x8] sm:$0xff]  ;;  %v2152_v22 = vld [vmem:[#allocation2 + $0x18] sm:$0xf0]  ;;  %v2586_v37 = vld [vmem:[#allocation2 + $0xb4] sm:$0xf0] }
  0xe3   :  { %v919_v63 = vadd.f32 %v911_v60, %v903_v59  ;;  %v2155_v24 = vor.u32 %v2565_v20, %v2152_v22  ;;  %v2216_v59 = vld [vmem:[#allocation2 + $0x98] sm:$0xf0]  ;;  %v2624_v22 = vld [vmem:[#allocation4 + $0xe4] sm:$0xf0] }
  0xe4   :  { %989 = vmatpush.msra.mxu2 %v922_v34  ;;  %v2239_v34 = vor.u32 %v2588_v26, %v2238_v25  ;;  %v925_v55 = vadd.f32 %v917_v48, %v909_v46  ;;  %1238 = vmatpush.bf16.msrb.mxu0 %v2167_v8  ;;  %v3562_v25 = vld [vmem:[%s3589_s7] sm:$0x3]  ;;  %v2584_v46 = vld [vmem:[#allocation2 + $0xa4] sm:$0xf0]  ;;  %v2320_v8 = vld [vmem:[#allocation4 + $0x68] sm:$0xf0] }
  0xe5   :  { %v2142_v26 = vld [vmem:[#allocation2] sm:$0xf]  ;;  %v2312_v20 = vld [vmem:[#allocation4 + $0x58] sm:$0xf0] }
  0xe6   :  { %990 = vmatpush.msra.mxu2 %v920_v41  ;;  %v889_v41 = vld [vmem:[%s3584_s2 + $0x18] sm:$0xff]  ;;  %1250 = vmatpush.bf16.msrb.mxu1 %v2239_v34  ;;  %v1018_v34 = vperm.slane %v3562_v25, 0 }
  0xe8   :  { %991 = vmatpush.msra.mxu2 %v918_v42  ;;  %v899_v42 = vld [vmem:[%s3583_s1 + $0x28] sm:$0xff] }
  0xe9   :  { %2138 = vmatmul.msk.f32.vlgmr.msra.gmra.mxu2 %vm972_vm1, %v3517_v43  ;;  %v907_v51 = vmul.f32 3.0, %v899_v42 }
  0xea   :  { %1260 = vmatpush.bf16.msrb.mxu2 %v2203_v57 }
  0xeb   :  { %v923_v57 = vadd.f32 %v915_v52, %v907_v51  ;;  %v3565_v52 = vpop.permute.xlu0 %1029 }
  0xee   :  { %1261 = vmatpush.bf16.msrb.mxu2 %v2195_v35 }
  0xef   :  { %v839_v47 = vpop.f32.mrf.mxu0 }
  0xf0   :  { %v853_v58 = vpop.f32.mrf.mxu1  ;;  %v840_v10 = vadd.f32 %v839_v47, %v826_v2  ;;  %v887_v47 = vld [vmem:[%s3584_s2 + $0x8] sm:$0xff]  ;;  %v2248_v2 = vld [vmem:[#allocation2 + $0xd8] sm:$0xf0] }
  0xf1   :  { %v2251_v35 = vor.u32 %v2589_v23, %v2248_v2  ;;  %v2610_v23 = vld [vmem:[#allocation4 + $0x74] sm:$0xf0]  ;;  %v2609_v2 = vld [vmem:[#allocation4 + $0x74] sm:$0xf] }
  0xf2   :  { %v854_v27 = vadd.f32 %v853_v58, %v840_v10  ;;  %1262 = vmatpush.bf16.msrb.mxu2 %v2187_v17  ;;  %v913_v58 = vld [vmem:[%s3585_s3 + $0x18] sm:$0xff]  ;;  %v2163_v17 = vor.u32 %v2567_v14, %v2160_v16  ;;  %v2323_v14 = vor.u32 %v2607_v7, %v2320_v8 }
  0xf3   :  { %v921_v5 = vadd.f32 %v913_v58, %v905_v56  ;;  %v2168_v10 = vld [vmem:[#allocation2 + $0x38] sm:$0xf0]  ;;  %v2581_v56 = vld [vmem:[#allocation2 + $0x94] sm:$0xf] }
  0xf4   :  { %v2219_v60 = vor.u32 %v2581_v56, %v2216_v59  ;;  %v2360_v8 = vld [vmem:[#allocation4 + $0xb8] sm:$0xf0] }
  0xf6   :  { %1263 = vmatpush.bf16.msrb.mxu2 %v2179_v31  ;;  %v2144_v31 = vld [vmem:[#allocation2 + $0x8] sm:$0xf0] }
  0xf7   :  { %v867_v4 = vpop.f32.mrf.mxu2  ;;  %v841_v13 = vpop.f32.mrf.mxu0 }
  0xf8   :  { %v881_v12 = vpop.f32.mrf.mxu3  ;;  %v842_v18 = vadd.f32 %v841_v13, %v828_v9  ;;  %v855_v29 = vpop.f32.mrf.mxu1  ;;  %v868_v32 = vadd.f32 %v867_v4, %v854_v27  ;;  %v2243_v4 = vor.u32 %v2587_v3, %v2240_v39  ;;  %v2569_v9 = vld [vmem:[#allocation2 + $0x34] sm:$0xf]  ;;  %v2568_v13 = vld [vmem:[#allocation2 + $0x24] sm:$0xf0]  ;;  %v2328_v3 = vld [vmem:[#allocation4 + $0x78] sm:$0xf0] }
  0xf9   :  { %v2564_v27 = vld [vmem:[#allocation2 + $0x4] sm:$0xf0]  ;;  %v2318_v39 = vld [vmem:[#allocation4 + $0x60] sm:$0xf]  ;;  %v2331_v6 = vor.u32 %v2609_v2, %v2328_v3 }
  0xfa   :  { %v856_v33 = vadd.f32 %v855_v29, %v842_v18  ;;  %v882_v44 = vadd.f32 %v881_v12, %v868_v32  ;;  %v2171_v12 = vor.u32 %v2569_v9, %v2168_v10  ;;  %v2150_v18 = vld [vmem:[#allocation2 + $0x10] sm:$0xf]  ;;  %v2143_v29 = vor.u32 %v2564_v27, %v2142_v26  ;;  %v2623_v26 = vld [vmem:[#allocation4 + $0xe4] sm:$0xf]  ;;  %v2384_v27 = vld [vmem:[#allocation4 + $0xe8] sm:$0xf0] }
  0xfb   :  { %v2151_v21 = vor.u32 %v2566_v19, %v2150_v18  ;;  %v2390_v9 = vld [vmem:[#allocation4 + $0xf0] sm:$0xf]  ;;  %v2606_v18 = vld [vmem:[#allocation4 + $0x54] sm:$0xf0]  ;;  %v2605_v19 = vld [vmem:[#allocation4 + $0x54] sm:$0xf] }
  0xfc   :  { %v891_v54 = vadd.f32 %v887_v47, %v882_v44  ;;  %1264 = vmatpush.bf16.msrb.mxu2 %v2171_v12  ;;  %v2583_v47 = vld [vmem:[#allocation2 + $0xa4] sm:$0xf]  ;;  %v2626_v12 = vld [vmem:[#allocation4 + $0xf4] sm:$0xf0] }
  0xff   :  { %v869_v36 = vpop.f32.mrf.mxu2 }
 0x100   :  { %v870_v38 = vadd.f32 %v869_v36, %v856_v33  ;;  %v883_v40 = vpop.f32.mrf.mxu3  ;;  %1265 = vmatpush.bf16.msrb.mxu2 %v2163_v17  ;;  %v2147_v33 = vor.u32 %v2563_v28, %v2144_v31  ;;  %v2230_v36 = vld [vmem:[#allocation2 + $0xb0] sm:$0xf]  ;;  %v2302_v31 = vld [vmem:[#allocation4 + $0x40] sm:$0xf] }
 0x101   :  { %v2310_v17 = vld [vmem:[#allocation4 + $0x50] sm:$0xf] }
 0x102   :  { %v884_v45 = vadd.f32 %v883_v40, %v870_v38  ;;  %v2585_v38 = vld [vmem:[#allocation2 + $0xb4] sm:$0xf]  ;;  %v2231_v40 = vor.u32 %v2586_v37, %v2230_v36  ;;  %v2311_v28 = vor.u32 %v2606_v18, %v2310_v17  ;;  %v2622_v36 = vld [vmem:[#allocation4 + $0xd4] sm:$0xf0]  ;;  %v2615_v17 = vld [vmem:[#allocation4 + $0xa4] sm:$0xf] }
 0x103   :  { %v2621_v37 = vld [vmem:[#allocation4 + $0xd4] sm:$0xf] }
 0x104   :  { %v893_v50 = vadd.f32 %v889_v41, %v884_v45  ;;  %1266 = vmatpush.bf16.msrb.mxu2 %v2155_v24  ;;  %v2232_v41 = vld [vmem:[#allocation2 + $0xb8] sm:$0xf0]  ;;  %1251 = vmatpush.bf16.msrb.mxu1 %v2231_v40  ;;  %v2222_v45 = vld [vmem:[#allocation2 + $0xa0] sm:$0xf]  ;;  %v2304_v40 = vld [vmem:[#allocation4 + $0x48] sm:$0xf0] }
 0x105   :  { %v2235_v42 = vor.u32 %v2585_v38, %v2232_v41  ;;  %v2223_v48 = vor.u32 %v2584_v46, %v2222_v45  ;;  %v2603_v38 = vld [vmem:[#allocation4 + $0x44] sm:$0xf]  ;;  %v2376_v41 = vld [vmem:[#allocation4 + $0xd8] sm:$0xf0]  ;;  %v2366_v45 = vld [vmem:[#allocation4 + $0xc0] sm:$0xf] }
 0x106   :  { %965 = vmatpush.msrb.mxu3 %v893_v50  ;;  %v2227_v50 = vor.u32 %v2583_v47, %v2224_v49  ;;  %v2620_v47 = vld [vmem:[#allocation4 + $0xc4] sm:$0xf0]  ;;  %v2368_v49 = vld [vmem:[#allocation4 + $0xc8] sm:$0xf0] }
 0x107   :  { %v2367_v56 = vor.u32 %v2620_v47, %v2366_v45  ;;  %v2336_v45 = vld [vmem:[#allocation4 + $0x88] sm:$0xf0] }
 0x108   :  { %966 = vmatpush.msrb.mxu3 %v891_v54  ;;  %1267 = vmatpush.bf16.msrb.mxu2 %v2147_v33  ;;  %v2214_v54 = vld [vmem:[#allocation2 + $0x90] sm:$0xf]  ;;  %v2315_v33 = vor.u32 %v2605_v19, %v2312_v20  ;;  %v2352_v19 = vld [vmem:[#allocation4 + $0xa8] sm:$0xf0] }
 0x109   :  { %2137 = vmatmul.msk.f32.vlgmr.msrb.gmra.mxu3 %vm927_vm0, %v3504_v30  ;;  %v2259_v30 = vor.u32 %v2591_v11, %v2256_v1  ;;  %1252 = vmatpush.bf16.msrb.mxu1 %v2223_v48  ;;  %v2208_v11 = vld [vmem:[#allocation2 + $0x88] sm:$0xf0]  ;;  %v2619_v48 = vld [vmem:[#allocation4 + $0xc4] sm:$0xf]  ;;  %v2355_v20 = vor.u32 %v2615_v17, %v2352_v19 }
 0x10a   :  { %1008 = vmatpush.msra.mxu3 %v925_v55  ;;  %v2582_v55 = vld [vmem:[#allocation2 + $0x94] sm:$0xf0] }
 0x10c   :  { %1009 = vmatpush.msra.mxu3 %v923_v57  ;;  %v2215_v57 = vor.u32 %v2582_v55, %v2214_v54  ;;  %1514 = vmatpush.bf16.msra.mxu2 %v2331_v6  ;;  %v2601_v54 = vld [vmem:[#allocation4 + $0x34] sm:$0xf]  ;;  %v2296_v55 = vld [vmem:[#allocation4 + $0x38] sm:$0xf0] }
 0x10d   :  { %v2299_v59 = vor.u32 %v2601_v54, %v2296_v55  ;;  %v2617_v6 = vld [vmem:[#allocation4 + $0xb4] sm:$0xf]  ;;  %v2640_v54 = vld [vmem:[#allocation6 + $0x68] sm:$0xff]  ;;  %v1068_v55 = vld [vmem:[%s3593_s11] sm:$0x3] }
 0x10e   :  { %1010 = vmatpush.msra.mxu3 %v921_v5  ;;  %1253 = vmatpush.bf16.msrb.mxu1 %v2215_v57 }
 0x110   :  { %1011 = vmatpush.msra.mxu3 %v919_v63  ;;  %v2579_v63 = vld [vmem:[#allocation2 + $0x84] sm:$0xf]  ;;  %1515 = vmatpush.bf16.msra.mxu2 %v2323_v14  ;;  %v2280_v14 = vld [vmem:[#allocation4 + $0x18] sm:$0xf0] }
 0x111   :  { %2139 = vmatmul.msk.f32.vlgmr.msra.gmra.mxu3 %vm972_vm1, %v3517_v43  ;;  %v2158_v43 = vld [vmem:[#allocation2 + $0x20] sm:$0xf]  ;;  %v2211_v1 = vor.u32 %v2579_v63, %v2208_v11  ;;  %v2288_v63 = vld [vmem:[#allocation4 + $0x28] sm:$0xf0]  ;;  %v1019_v11 = vperm.slane %v3562_v25, 1 }
 0x112   :  { %1273 = vmatpush.bf16.msrb.mxu3 %v2267_v0  ;;  %v2159_v15 = vor.u32 %v2568_v13, %v2158_v43  ;;  %v2207_v0 = vor.u32 %v2580_v62, %v2206_v61  ;;  %v2625_v43 = vld [vmem:[#allocation4 + $0xf4] sm:$0xf]  ;;  %v2392_v13 = vld [vmem:[#allocation4 + $0xf8] sm:$0xf0]  ;;  %v2599_v62 = vld [vmem:[#allocation4 + $0x24] sm:$0xf] }
 0x113   :  { %v2395_v16 = vor.u32 %v2625_v43, %v2392_v13  ;;  %v2597_v43 = vld [vmem:[#allocation4 + $0x14] sm:$0xf] }
 0x114   :  { %1239 = vmatpush.bf16.msrb.mxu0 %v2159_v15  ;;  %1254 = vmatpush.bf16.msrb.mxu1 %v2207_v0  ;;  %v2391_v15 = vor.u32 %v2626_v12, %v2390_v9  ;;  %v2363_v9 = vor.u32 %v2617_v6, %v2360_v8  ;;  %v2598_v12 = vld [vmem:[#allocation4 + $0x14] sm:$0xf0]  ;;  %v2628_v6 = vld [vmem:[#allocation6 + $0x8] sm:$0xff]  ;;  %v2627_v8 = vld [vmem:[#allocation6] sm:$0xff] }
 0x115   :  { %1516 = vmatpush.bf16.msra.mxu2 %v2315_v33  ;;  %v2614_v33 = vld [vmem:[#allocation4 + $0x94] sm:$0xf0] }
 0x116   :  { %1274 = vmatpush.bf16.msrb.mxu3 %v2259_v30  ;;  %v2326_v30 = vld [vmem:[#allocation4 + $0x70] sm:$0xf] }
 0x118   :  { %1240 = vmatpush.bf16.msrb.mxu0 %v2151_v21  ;;  %v2382_v21 = vld [vmem:[#allocation4 + $0xe0] sm:$0xf]  ;;  %1501 = vmatpush.bf16.msra.mxu1 %v2391_v15  ;;  %v2283_v15 = vor.u32 %v2597_v43, %v2280_v14 }
 0x119   :  { %v2383_v24 = vor.u32 %v2624_v22, %v2382_v21  ;;  %v2270_v22 = vld [vmem:[#allocation4] sm:$0xf] }
 0x11a   :  { %1275 = vmatpush.bf16.msrb.mxu3 %v2251_v35  ;;  %v2327_v35 = vor.u32 %v2610_v23, %v2326_v30 }
 0x11c   :  { %1241 = vmatpush.bf16.msrb.mxu0 %v2143_v29  ;;  %v2387_v29 = vor.u32 %v2623_v26, %v2384_v27  ;;  %1502 = vmatpush.bf16.msra.mxu1 %v2383_v24  ;;  %v2596_v24 = vld [vmem:[#allocation4 + $0x4] sm:$0xf0]  ;;  %v2595_v26 = vld [vmem:[#allocation4 + $0x4] sm:$0xf] }
 0x11d   :  { %v2271_v27 = vor.u32 %v2596_v24, %v2270_v22 }
 0x11e   :  { %1276 = vmatpush.bf16.msrb.mxu3 %v2243_v4  ;;  %v2608_v4 = vld [vmem:[#allocation4 + $0x64] sm:$0xf0] }
 0x11f   :  { %v2319_v10 = vor.u32 %v2608_v4, %v2318_v39  ;;  %v2358_v39 = vld [vmem:[#allocation4 + $0xb0] sm:$0xf]  ;;  %v2618_v4 = vld [vmem:[#allocation4 + $0xb4] sm:$0xf0] }
 0x120   :  { %1488 = vmatpush.bf16.msra.mxu0 %v2327_v35  ;;  %v2359_v7 = vor.u32 %v2618_v4, %v2358_v39  ;;  %v2629_v39 = vld [vmem:[#allocation6 + $0x10] sm:$0xff]  ;;  %v2638_v4 = vld [vmem:[#allocation6 + $0x58] sm:$0xff] }
 0x122   :  { %1277 = vmatpush.bf16.msrb.mxu3 %v2235_v42 }
 0x124   :  { %1489 = vmatpush.bf16.msra.mxu0 %v2319_v10  ;;  %v2278_v10 = vld [vmem:[#allocation4 + $0x10] sm:$0xf] }
 0x125   :  { %v2279_v13 = vor.u32 %v2598_v12, %v2278_v10  ;;  %v1322_v10 = vld [vmem:[%s3595_s13] sm:$0x3] }
 0x126   :  { %1278 = vmatpush.bf16.msrb.mxu3 %v2227_v50  ;;  %v2307_v50 = vor.u32 %v2603_v38, %v2304_v40  ;;  %v2334_v40 = vld [vmem:[#allocation4 + $0x80] sm:$0xf]  ;;  %v1324_v43 = vperm.slane %v1322_v10, 0 }
 0x128   :  { %1490 = vmatpush.bf16.msra.mxu0 %v2311_v28  ;;  %1517 = vmatpush.bf16.msra.mxu2 %v2307_v50  ;;  %v2272_v28 = vld [vmem:[#allocation4 + $0x8] sm:$0xf0]  ;;  %v2633_v50 = vld [vmem:[#allocation6 + $0x30] sm:$0xff] }
 0x12a   :  { %1279 = vmatpush.bf16.msrb.mxu3 %v2219_v60  ;;  %v2286_v60 = vld [vmem:[#allocation4 + $0x20] sm:$0xf] }
 0x12c   :  { %1518 = vmatpush.bf16.msra.mxu2 %v2299_v59 }
 0x12e   :  { %1280 = vmatpush.bf16.msrb.mxu3 %v2211_v1  ;;  %v2291_v1 = vor.u32 %v2599_v62, %v2288_v63 }
 0x130   :  { %1519 = vmatpush.bf16.msra.mxu2 %v2291_v1 }
 0x132   :  { %1527 = vmatpush.bf16.msra.mxu3 %v2395_v16  ;;  %v2350_v16 = vld [vmem:[#allocation4 + $0xa0] sm:$0xf] }
 0x134   :  { %1520 = vmatpush.bf16.msra.mxu2 %v2283_v15 }
 0x136   :  { %1528 = vmatpush.bf16.msra.mxu3 %v2387_v29  ;;  %v2275_v29 = vor.u32 %v2595_v26, %v2272_v28 }
 0x138   :  { %1521 = vmatpush.bf16.msra.mxu2 %v2275_v29 }
 0x164   :  { %v948_v32 = vpop.f32.mrf.mxu2 }
 0x165   :  { %v1022_v44 = vadd.f32 %v1018_v34, %v948_v32  ;;  %v2604_v32 = vld [vmem:[#allocation4 + $0x44] sm:$0xf0]  ;;  %v2374_v34 = vld [vmem:[#allocation4 + $0xd0] sm:$0xf] }
 0x166   :  { %v2375_v42 = vor.u32 %v2622_v36, %v2374_v34  ;;  %v2303_v46 = vor.u32 %v2604_v32, %v2302_v31  ;;  %v2342_v32 = vld [vmem:[#allocation4 + $0x90] sm:$0xf]  ;;  %v2613_v34 = vld [vmem:[#allocation4 + $0x94] sm:$0xf] }
 0x167   :  { %v2343_v36 = vor.u32 %v2614_v33, %v2342_v32  ;;  %v2652_v32 = vld [vmem:[%s3597_s15] ss:$0 sm:$0xff] }
 0x168   :  { %1503 = vmatpush.bf16.msra.mxu1 %v2375_v42  ;;  %1491 = vmatpush.bf16.msra.mxu0 %v2303_v46  ;;  %v2611_v42 = vld [vmem:[#allocation4 + $0x84] sm:$0xf] }
 0x169   :  { %v2339_v46 = vor.u32 %v2611_v42, %v2336_v45 }
 0x16c   :  { %v993_v51 = vpop.f32.mrf.mxu2  ;;  %1504 = vmatpush.bf16.msra.mxu1 %v2367_v56  ;;  %v2631_v56 = vld [vmem:[#allocation6 + $0x20] sm:$0xff] }
 0x16d   :  { %v1024_v53 = vadd.f32 %v1022_v44, %v993_v51  ;;  %v2379_v44 = vor.u32 %v2621_v37, %v2376_v41  ;;  %v2294_v51 = vld [vmem:[#allocation4 + $0x30] sm:$0xf]  ;;  %v2344_v37 = vld [vmem:[#allocation4 + $0x98] sm:$0xf0]  ;;  %v2612_v41 = vld [vmem:[#allocation4 + $0x84] sm:$0xf0] }
 0x16e   :  { %v2347_v38 = vor.u32 %v2613_v34, %v2344_v37 }
 0x16f   :  { %v1032_v58 = vmul.f32 %v3565_v52, %v1024_v53  ;;  %v2602_v53 = vld [vmem:[#allocation4 + $0x34] sm:$0xf0]  ;;  %1529 = vmatpush.bf16.msra.mxu3 %v2379_v44  ;;  %v2335_v44 = vor.u32 %v2612_v41, %v2334_v40 }
 0x170   :  { %v2295_v57 = vor.u32 %v2602_v53, %v2294_v51  ;;  %1505 = vmatpush.bf16.msra.mxu1 %v2359_v7  ;;  %v2641_v51 = vld [vmem:[#allocation6 + $0x70] sm:$0xff]  ;;  %v2632_v53 = vld [vmem:[#allocation6 + $0x28] sm:$0xff] }
 0x171   :  { %v1034_v5 = vpack.c.bf16 %v1032_v58, %v1032_v58  ;;  %v2371_v58 = vor.u32 %v2619_v48, %v2368_v49  ;;  %v2634_v48 = vld [vmem:[#allocation6 + $0x38] sm:$0xff]  ;;  %v2637_v7 = vld [vmem:[#allocation6 + $0x50] sm:$0xff] }
 0x172   :  { %1492 = vmatpush.bf16.msra.mxu0 %v2295_v57  ;;  %v2642_v49 = vld [vmem:[#allocation6 + $0x78] sm:$0xff] }
 0x173   :  { %1242 = vmatmul.bf16.vlgmr.msrb.gmra.mxu0 %v1034_v5  ;;  %1268 = vmatmul.bf16.vlgmr.msrb.gmra.mxu2 %v1034_v5  ;;  %v2600_v5 = vld [vmem:[#allocation4 + $0x24] sm:$0xf0]  ;;  %v2630_v57 = vld [vmem:[#allocation6 + $0x18] sm:$0xff] }
 0x174   :  { %1530 = vmatpush.bf16.msra.mxu3 %v2371_v58  ;;  %v2287_v0 = vor.u32 %v2600_v5, %v2286_v60  ;;  %v1070_v58 = vperm.slane %v1068_v55, 0 }
 0x176   :  { %1493 = vmatpush.bf16.msra.mxu0 %v2287_v0 }
 0x178   :  { %1531 = vmatpush.bf16.msra.mxu3 %v2363_v9  ;;  %v2636_v9 = vld [vmem:[#allocation6 + $0x48] sm:$0xff] }
 0x17a   :  { %1494 = vmatpush.bf16.msra.mxu0 %v2279_v13 }
 0x17c   :  { %1532 = vmatpush.bf16.msra.mxu3 %v2355_v20 }
 0x17e   :  { %1495 = vmatpush.bf16.msra.mxu0 %v2271_v27 }
 0x180   :  { %1533 = vmatpush.bf16.msra.mxu3 %v2347_v38 }
 0x182   :  { %1676 = vmatpush.bf16.msrb.mxu0 %v2634_v48 }
 0x184   :  { %1534 = vmatpush.bf16.msra.mxu3 %v2339_v46 }
 0x186   :  { %1677 = vmatpush.bf16.msrb.mxu0 %v2633_v50 }
 0x18a   :  { %1678 = vmatpush.bf16.msrb.mxu0 %v2632_v53 }
 0x18c   :  { %v968_v61 = vpop.f32.mrf.mxu3 }
 0x18d   :  { %v1023_v30 = vadd.f32 %v1019_v11, %v968_v61  ;;  %v1071_v61 = vperm.slane %v1068_v55, 1 }
 0x18e   :  { %1679 = vmatpush.bf16.msrb.mxu0 %v2631_v56 }
 0x192   :  { %1680 = vmatpush.bf16.msrb.mxu0 %v2630_v57 }
 0x194   :  { %v1013_v23 = vpop.f32.mrf.mxu3 }
 0x195   :  { %v1025_v2 = vadd.f32 %v1023_v30, %v1013_v23 }
 0x196   :  { %1681 = vmatpush.bf16.msrb.mxu0 %v2629_v39 }
 0x197   :  { %v1033_v35 = vmul.f32 %v3565_v52, %v1025_v2  ;;  %v2616_v52 = vld [vmem:[#allocation4 + $0xa4] sm:$0xf0] }
 0x198   :  { %v2351_v18 = vor.u32 %v2616_v52, %v2350_v16  ;;  %v1325_v52 = vperm.slane %v1322_v10, 1 }
 0x199   :  { %v1035_v3 = vpack.c.bf16 %v1033_v35, %v1033_v35 }
 0x19a   :  { %1506 = vmatpush.bf16.msra.mxu1 %v2351_v18  ;;  %1682 = vmatpush.bf16.msrb.mxu0 %v2628_v6 }
 0x19b   :  { %1255 = vmatmul.bf16.vlgmr.msrb.gmra.mxu1 %v1035_v3  ;;  %1281 = vmatmul.bf16.vlgmr.msrb.gmra.mxu3 %v1035_v3  ;;  %v2639_v3 = vld [vmem:[#allocation6 + $0x60] sm:$0xff] }
 0x19e   :  { %1507 = vmatpush.bf16.msra.mxu1 %v2343_v36  ;;  %1683 = vmatpush.bf16.msrb.mxu0 %v2627_v8 }
 0x1a2   :  { %1508 = vmatpush.bf16.msra.mxu1 %v2335_v44 }
 0x1a6   :  { %1689 = vmatpush.bf16.msrb.mxu1 %v2642_v49 }
 0x1aa   :  { %1690 = vmatpush.bf16.msrb.mxu1 %v2641_v51 }
 0x1ae   :  { %1691 = vmatpush.bf16.msrb.mxu1 %v2640_v54 }
 0x1b2   :  { %1692 = vmatpush.bf16.msrb.mxu1 %v2639_v3 }
 0x1b6   :  { %1693 = vmatpush.bf16.msrb.mxu1 %v2638_v4 }
 0x1ba   :  { %1694 = vmatpush.bf16.msrb.mxu1 %v2637_v7 }
 0x1be   :  { %1695 = vmatpush.bf16.msrb.mxu1 %v2636_v9 }
 0x1f0   :  { %v1243_v25 = vpop.f32.mrf.mxu0 }
 0x1f1   :  { %v1244_v59 = vadd.f32 %v1243_v25, %v1070_v58  ;;  %v2635_v25 = vld [vmem:[#allocation6 + $0x40] sm:$0xff] }
 0x1f2   :  { %1696 = vmatpush.bf16.msrb.mxu1 %v2635_v25 }
 0x1f6   :  { %v1269_v21 = vpop.f32.mrf.mxu2 }
 0x1f7   :  { %v1270_v0 = vadd.f32 %v1269_v21, %v1071_v61 }
 0x1f8   :  { %v1245_v31 = vpop.f32.mrf.mxu0 }
 0x1fe   :  { %v1271_v47 = vpop.f32.mrf.mxu2 }
 0x218   :  { %v1256_v60 = vpop.f32.mrf.mxu1 }
 0x219   :  { %v1257_v5 = vadd.f32 %v1256_v60, %v1244_v59 }
 0x21b   :  { %v1286_v62 = vmax.f32 %v1257_v5, 0.0 }
 0x21d   :  { %v1288_v63 = vpack.c.bf16 %v1286_v62, %v1286_v62 }
 0x21e   :  { %v1282_v11 = vpop.f32.mrf.mxu3 }
 0x21f   :  { %v1283_v1 = vadd.f32 %v1282_v11, %v1270_v0  ;;  %1496 = vmatmul.bf16.vlgmr.msra.gmra.mxu0 %v1288_v63  ;;  %1522 = vmatmul.bf16.vlgmr.msra.gmra.mxu2 %v1288_v63 }
 0x220   :  { %v1258_v30 = vpop.f32.mrf.mxu1 }
 0x221   :  { %v1287_v23 = vmax.f32 %v1283_v1, 0.0 }
 0x223   :  { %v1289_v2 = vpack.c.bf16 %v1287_v23, %v1287_v23 }
 0x225   :  { %1509 = vmatmul.bf16.vlgmr.msra.gmra.mxu1 %v1289_v2  ;;  %1535 = vmatmul.bf16.vlgmr.msra.gmra.mxu3 %v1289_v2 }
 0x226   :  { %v1284_v35 = vpop.f32.mrf.mxu3 }
 0x29c   :  { %v1497_v12 = vpop.f32.mrf.mxu0 }
 0x29d   :  { %v1498_v13 = vadd.f32 %v1497_v12, %v1324_v43 }
 0x2a2   :  { %v1510_v14 = vpop.f32.mrf.mxu1  ;;  %v1523_v15 = vpop.f32.mrf.mxu2 }
 0x2a3   :  { %v1511_v16 = vadd.f32 %v1510_v14, %v1498_v13  ;;  %v1524_v20 = vadd.f32 %v1523_v15, %v1325_v52 }
 0x2a4   :  { %v1499_v17 = vpop.f32.mrf.mxu0 }
 0x2a5   :  { %v1540_v18 = vmax.f32 %v1511_v16, 0.0 }
 0x2a7   :  { %v1542_v19 = vpack.c.bf16 %v1540_v18, %v1540_v18 }
 0x2a8   :  { %v1536_v21 = vpop.f32.mrf.mxu3 }
 0x2a9   :  { %v1537_v22 = vadd.f32 %v1536_v21, %v1524_v20  ;;  %1684 = vmatmul.bf16.vlgmr.msrb.gmra.mxu0 %v1542_v19 }
 0x2aa   :  { %v1512_v24 = vpop.f32.mrf.mxu1  ;;  %v1525_v26 = vpop.f32.mrf.mxu2 }
 0x2ab   :  { %v1541_v27 = vmax.f32 %v1537_v22, 0.0 }
 0x2ad   :  { %v1543_v28 = vpack.c.bf16 %v1541_v27, %v1541_v27 }
 0x2af   :  { %1697 = vmatmul.bf16.vlgmr.msrb.gmra.mxu1 %v1543_v28 }
 0x2b0   :  { %v1538_v29 = vpop.f32.mrf.mxu3 }
 0x326   :  { %v1685_v31 = vpop.f32.mrf.mxu0 }
 0x327   :  { %v1686_v33 = vadd.f32 %v2652_v32, %v1685_v31 }
 0x32c   :  { %v1698_v34 = vpop.f32.mrf.mxu1 }
 0x32d   :  { %v1699_v36 = vadd.f32 %v1698_v34, %v1686_v33 }
 0x32e   :  { %v1687_v37 = vpop.f32.mrf.mxu0 }
 0x32f   :  { %v2460_v38 = vmul.f32 -1.442695, %v1699_v36 }
 0x331   :  { %2653 = vpow2.f32 %v2460_v38 }
 0x334   :  { %v1700_v40 = vpop.f32.mrf.mxu1 }
 0x337   :  { %v2654_v41 = vpop.eup %2653 }
 0x338   :  { %v1705_v42 = vadd.f32 1.0, %v2654_v41 }
 0x33a   :  { %2655 = vrcp.f32 %v1705_v42  ;;  %v1717_v47 = vand.u32 2147483648, %v1705_v42  ;;  %v1715_v49 = vand.u32 2147483647, %v1705_v42  ;;  %vm1711_vm3 = vweird.f32 %v1705_v42 }
 0x33c   :  { %v1718_v51 = vor.u32 1.1754944e-38, %v1717_v47  ;;  %vm1716_vm5 = vcmp.eq.f32.partialorder %v1715_v49, 8.507059e+37 }
 0x340   :  { %v2656_v44 = vpop.eup %2655 }
 0x341   :  { %v1707_v45 = vmul.f32 %v2656_v44, %v1705_v42  ;;  %vm1712_vm2 = vweird.f32 %v2656_v44 }
 0x342   :  { %vm1713_vm4 = vmor %vm1711_vm3, %vm1712_vm2 }
 0x343   :  { %v1708_v46 = vsub.f32 1.0, %v1707_v45 }
 0x345   :  { %v1709_v48 = vmul.f32 %v2656_v44, %v1708_v46 }
 0x347   :  { %v1710_v50 = vadd.f32 %v2656_v44, %v1709_v48 }
 0x349   :  { %v1714_v53 = vsel %vm1713_vm4, %v2656_v44, %v1710_v50 }
 0x34a   :  { %v1719_v54 = vsel %vm1716_vm5, %v1718_v51, %v1714_v53 }
 0x34b   :  { %1721 = vst [vmem:[%s3598_s16] sm:$0xff] %v1719_v54 }
 0x34c   :  { %1726 = vsyncpa [#allocation3], 1 }
 0x34d   :  { %1727 = vsyncpa [#allocation5], 1 }

</bundles_post_ra>
